<compile_context>
chip_gen: v5e
topology: v5e:2x2
jax: 0.10.0
libtpu: 0.0.40
codegen_flags: <defaults>
</compile_context>

<pallas_src>
import functools

import jax
import jax.numpy as jnp
import numpy as np
from jax import lax
from jax.experimental import pallas as pl
from jax.experimental.pallas import tpu as pltpu


def lstm_fc_softmax_kernel(x_ref, wih_ref, whh_ref, b_ref, wfc_ref, bfc_ref,
                           out_ref, gx_scr, h_scr, c_scr):
    c_idx = pl.program_id(0)
    n_chunks = pl.num_programs(0)
    B, H = h_scr.shape
    TC = gx_scr.shape[0] // B          # time steps in this chunk (static)

    @pl.when(c_idx == 0)
    def _():
        # h0 = c0 = zeros, as in the PyTorch forward.
        h_scr[...] = jnp.zeros_like(h_scr)
        c_scr[...] = jnp.zeros_like(c_scr)

    # ---- Phase 1: hoisted input projection for the whole chunk -------------
    # One large matmul (M = TC*B) instead of TC tiny M=B matmuls; bias folded
    # in here, once, instead of per step.
    gx_scr[...] = (
        jnp.dot(x_ref[...], wih_ref[...], preferred_element_type=jnp.float32)
        + b_ref[...])                                   # (TC*B, 4H) f32

    # ---- Phase 2: sequential recurrence (the only truly serial work) -------
    # Gate columns were permuted in the wrapper to [i|f|o|g]: the three sigmoid
    # gates are one contiguous 3H-wide slab -> a single sigmoid per step.
    whh = whh_ref[...]                                  # (H, 4H) bf16, loaded once

    def step(t, carry):
        h, c = carry                                    # f32 (B, H) each
        r = pl.multiple_of(t * B, B)                    # sublane-aligned (B = 8)
        gates = gx_scr[pl.ds(r, B), :] + jnp.dot(
            h.astype(whh.dtype), whh,
            preferred_element_type=jnp.float32)         # (B, 4H) f32
        sig = jax.nn.sigmoid(gates[:, :3 * H])          # fused i | f | o
        i_g = sig[:, 0 * H:1 * H]
        f_g = sig[:, 1 * H:2 * H]
        o_g = sig[:, 2 * H:3 * H]
        g_g = jnp.tanh(gates[:, 3 * H:4 * H])
        c_new = f_g * c + i_g * g_g
        h_new = o_g * jnp.tanh(c_new)
        return h_new, c_new

    # Bounded unroll: full unroll is fine at TC=8 but would blow up vreg live
    # ranges for large time chunks.
    h, c = lax.fori_loop(0, TC, step, (h_scr[...], c_scr[...]),
                         unroll=min(TC, 8))
    h_scr[...] = h
    c_scr[...] = c

    # ---- Phase 3: fused Linear + Softmax(dim=1) head on the last chunk -----
    @pl.when(c_idx == n_chunks - 1)
    def _():
        logits = (jnp.dot(h.astype(wfc_ref.dtype), wfc_ref[...],
                          preferred_element_type=jnp.float32)
                  + bfc_ref[...])                        # (B, O) f32
        m = jnp.max(logits, axis=1, keepdims=True)
        e = jnp.exp(logits - m)
        denom = jnp.sum(e, axis=1, keepdims=True)
        # Exact division (runs once, off the hot path) so rows sum to 1 to
        # f32 accuracy; pl.reciprocal(approx=True) was only ~1e-3 accurate.
        out_ref[...] = e / denom


@functools.partial(jax.jit, static_argnames=("time_chunk",))
def lstm_model_forward(x, w_ih, w_hh, b_ih, b_hh, w_fc, b_fc, *,
                       time_chunk=None):
    """x: (B, T, I) float32 (PyTorch batch_first layout)."""
    B, T, I = x.shape
    H = w_hh.shape[1]
    O = w_fc.shape[0]
    G = 4 * H

    TC = T if time_chunk is None else time_chunk
    assert T % TC == 0, "T must be a multiple of the time chunk"
    assert B % 8 == 0, "B must be a multiple of 8 (sublane tile)"
    n_chunks = T // TC

    def permute_gates(w):
        # Reorder PyTorch gate order i|f|g|o -> i|f|o|g along the last (4H)
        # axis so the sigmoid gates are contiguous inside the kernel.
        return jnp.concatenate(
            [w[..., :2 * H], w[..., 3 * H:4 * H], w[..., 2 * H:3 * H]], axis=-1)

    # Time-major, flattened to 2-D so the input projection is one big matmul.
    x2d = jnp.transpose(x, (1, 0, 2)).reshape(T * B, I).astype(jnp.bfloat16)
    wih_t = permute_gates(jnp.transpose(w_ih)).astype(jnp.bfloat16)   # (I, 4H)
    whh_t = permute_gates(jnp.transpose(w_hh)).astype(jnp.bfloat16)   # (H, 4H)
    b = permute_gates((b_ih + b_hh).reshape(1, G)).astype(jnp.float32)
    wfc_t = jnp.transpose(w_fc).astype(jnp.bfloat16)                  # (H, O)
    bfc = b_fc.reshape(1, O).astype(jnp.float32)

    grid_spec = pltpu.PrefetchScalarGridSpec(
        num_scalar_prefetch=0,
        grid=(n_chunks,),
        in_specs=[
            pl.BlockSpec((TC * B, I), lambda c: (c, 0)),   # x chunk
            pl.BlockSpec((I, G), lambda c: (0, 0)),        # W_ih^T (invariant)
            pl.BlockSpec((H, G), lambda c: (0, 0)),        # W_hh^T (invariant)
            pl.BlockSpec((1, G), lambda c: (0, 0)),        # folded LSTM bias
            pl.BlockSpec((H, O), lambda c: (0, 0)),        # W_fc^T
            pl.BlockSpec((1, O), lambda c: (0, 0)),        # b_fc
        ],
        out_specs=pl.BlockSpec((B, O), lambda c: (0, 0)),
        scratch_shapes=[
            pltpu.VMEM((TC * B, G), jnp.float32),  # hoisted gates_x for chunk
            pltpu.VMEM((B, H), jnp.float32),       # h carry across chunks
            pltpu.VMEM((B, H), jnp.float32),       # c carry across chunks
        ],
    )

    return pl.pallas_call(
        lstm_fc_softmax_kernel,
        out_shape=jax.ShapeDtypeStruct((B, O), jnp.float32),
        grid_spec=grid_spec,
        compiler_params=pltpu.CompilerParams(
            dimension_semantics=("arbitrary",),   # sequential carry over time
            # v5e/v6e have 128 MiB physical VMEM (16/32 MiB default scope);
            # on v7x (64 MiB) budget TC so gx_scr + 2x x chunk stays < ~48 MiB.
            vmem_limit_bytes=64 * 1024 * 1024,
        ),
    )(x2d, wih_t, whh_t, b, wfc_t, bfc)


def reference_forward(x, w_ih, w_hh, b_ih, b_hh, w_fc, b_fc):
    """Pure-JAX f32 reference matching PyTorch nn.LSTM + Linear + Softmax."""
    B, T, I = x.shape
    H = w_hh.shape[1]
    h = jnp.zeros((B, H), jnp.float32)
    c = jnp.zeros((B, H), jnp.float32)
    for t in range(T):
        gates = x[:, t, :] @ w_ih.T + h @ w_hh.T + b_ih + b_hh
        i_g = jax.nn.sigmoid(gates[:, 0 * H:1 * H])
        f_g = jax.nn.sigmoid(gates[:, 1 * H:2 * H])
        g_g = jnp.tanh(gates[:, 2 * H:3 * H])
        o_g = jax.nn.sigmoid(gates[:, 3 * H:4 * H])
        c = f_g * c + i_g * g_g
        h = o_g * jnp.tanh(c)
    logits = h @ w_fc.T + b_fc
    return jax.nn.softmax(logits, axis=1)


if __name__ == "__main__":
    # Small shapes consistent with the module (input_dim/hidden_dim shrunk);
    # H = 128 keeps gate slices lane-aligned, B = 8 keeps rows sublane-aligned.
    B, T, I, H, O = 8, 8, 64, 128, 5

    key = jax.random.PRNGKey(0)
    ks = jax.random.split(key, 6)
    bound = 1.0 / np.sqrt(H)  # PyTorch default uniform init range
    x = jax.random.normal(ks[0], (B, T, I), jnp.float32)
    w_ih = jax.random.uniform(ks[1], (4 * H, I), jnp.float32, -bound, bound)
    w_hh = jax.random.uniform(ks[2], (4 * H, H), jnp.float32, -bound, bound)
    b_ih = jax.random.uniform(ks[3], (4 * H,), jnp.float32, -bound, bound)
    b_hh = jax.random.uniform(ks[4], (4 * H,), jnp.float32, -bound, bound)
    w_fc = jax.random.uniform(ks[5], (O, H), jnp.float32, -bound, bound)
    b_fc = jnp.zeros((O,), jnp.float32)

    out = lstm_model_forward(x, w_ih, w_hh, b_ih, b_hh, w_fc, b_fc)
    out = jax.block_until_ready(out)

    ref = reference_forward(x, w_ih, w_hh, b_ih, b_hh, w_fc, b_fc)
    # bf16 MXU inputs (f32 accumulation) vs the f32 reference -> relaxed tol.
    np.testing.assert_allclose(np.asarray(out), np.asarray(ref),
                               rtol=2e-2, atol=2e-2)
    assert out.shape == (B, O)
    # Exact-division softmax: rows sum to 1 to f32 accuracy.
    np.testing.assert_allclose(np.asarray(out).sum(axis=1),
                               np.ones((B,), np.float32), rtol=1e-3, atol=1e-3)
    print("KERNEL_OK")
</pallas_src>

<mosaic_0001>
module attributes {stable_mosaic.version = 11 : i64} {
  func.func @lstm_fc_softmax_kernel(%arg0: i32, %arg1: memref<64x64xbf16, #tpu.memory_space<vmem>>, %arg2: memref<64x512xbf16, #tpu.memory_space<vmem>>, %arg3: memref<128x512xbf16, #tpu.memory_space<vmem>>, %arg4: memref<1x512xf32, #tpu.memory_space<vmem>>, %arg5: memref<128x5xbf16, #tpu.memory_space<vmem>>, %arg6: memref<1x5xf32, #tpu.memory_space<vmem>>, %arg7: memref<8x5xf32, #tpu.memory_space<vmem>>, %arg8: memref<64x512xf32, #tpu.memory_space<vmem>>, %arg9: memref<8x128xf32, #tpu.memory_space<vmem>>, %arg10: memref<8x128xf32, #tpu.memory_space<vmem>>) attributes {dimension_semantics = [#tpu.dimension_semantics<arbitrary>], iteration_bounds = array<i64: 1>, scalar_prefetch = 0 : i64, scratch_operands = 3 : i64, tpu.core_type = #tpu.core_type<tc>, window_params = [{transform_indices = @transform_0, window_bounds = array<i64: 64, 64>}, {pipeline_mode = #tpu.pipeline_mode<synchronous>, transform_indices = @transform_1, window_bounds = array<i64: 64, 512>}, {pipeline_mode = #tpu.pipeline_mode<synchronous>, transform_indices = @transform_2, window_bounds = array<i64: 128, 512>}, {pipeline_mode = #tpu.pipeline_mode<synchronous>, transform_indices = @transform_3, window_bounds = array<i64: 1, 512>}, {pipeline_mode = #tpu.pipeline_mode<synchronous>, transform_indices = @transform_4, window_bounds = array<i64: 128, 5>}, {pipeline_mode = #tpu.pipeline_mode<synchronous>, transform_indices = @transform_5, window_bounds = array<i64: 1, 5>}, {pipeline_mode = #tpu.pipeline_mode<synchronous>, transform_indices = @transform_6, window_bounds = array<i64: 8, 5>}]} {
    %c0_i32 = arith.constant 0 : i32
    %0 = arith.cmpi eq, %arg0, %c0_i32 : i32
    %1 = arith.extui %0 : i1 to i32
    %c0_i32_0 = arith.constant 0 : i32
    %2 = arith.cmpi ne, %1, %c0_i32_0 : i32
    scf.if %2 {
      %cst_53 = arith.constant 0.000000e+00 : f32
      %202 = vector.broadcast %cst_53 : f32 to vector<8x128xf32>
      %c0_54 = arith.constant 0 : index
      %c0_55 = arith.constant 0 : index
      %203 = vector.load %arg9[%c0_54, %c0_55] : memref<8x128xf32, #tpu.memory_space<vmem>>, vector<8x128xf32>
      tpu.vector_store %arg9[%c0_54, %c0_55], %202 {strides = array<i32>} : memref<8x128xf32, #tpu.memory_space<vmem>>, vector<8x128xf32>,
      %cst_56 = arith.constant 0.000000e+00 : f32
      %204 = vector.broadcast %cst_56 : f32 to vector<8x128xf32>
      %c0_57 = arith.constant 0 : index
      %c0_58 = arith.constant 0 : index
      %205 = vector.load %arg10[%c0_57, %c0_58] : memref<8x128xf32, #tpu.memory_space<vmem>>, vector<8x128xf32>
      tpu.vector_store %arg10[%c0_57, %c0_58], %204 {strides = array<i32>} : memref<8x128xf32, #tpu.memory_space<vmem>>, vector<8x128xf32>,
    } else {
    }
    %c0 = arith.constant 0 : index
    %c0_1 = arith.constant 0 : index
    %3 = vector.load %arg1[%c0, %c0_1] : memref<64x64xbf16, #tpu.memory_space<vmem>>, vector<64x64xbf16>
    %c0_2 = arith.constant 0 : index
    %c0_3 = arith.constant 0 : index
    %4 = vector.load %arg2[%c0_2, %c0_3] : memref<64x512xbf16, #tpu.memory_space<vmem>>, vector<64x512xbf16>
    %cst = arith.constant dense<0.000000e+00> : vector<64x512xf32>
    %5 = tpu.matmul %3, %4, %cst {dimension_numbers = #tpu.dot_dimension_numbers<[1], [0], [0], [1], [0, 0, 1, 1], [], []>} : vector<64x64xbf16>, vector<64x512xbf16>, vector<64x512xf32> -> vector<64x512xf32>
    %c0_4 = arith.constant 0 : index
    %c0_5 = arith.constant 0 : index
    %6 = vector.load %arg4[%c0_4, %c0_5] : memref<1x512xf32, #tpu.memory_space<vmem>>, vector<1x512xf32>
    %7 = vector.broadcast %6 : vector<1x512xf32> to vector<64x512xf32>
    %8 = arith.addf %5, %7 : vector<64x512xf32>
    %c0_6 = arith.constant 0 : index
    %c0_7 = arith.constant 0 : index
    %9 = vector.load %arg8[%c0_6, %c0_7] : memref<64x512xf32, #tpu.memory_space<vmem>>, vector<64x512xf32>
    tpu.vector_store %arg8[%c0_6, %c0_7], %8 {strides = array<i32>} : memref<64x512xf32, #tpu.memory_space<vmem>>, vector<64x512xf32>,
    %c0_8 = arith.constant 0 : index
    %c0_9 = arith.constant 0 : index
    %10 = vector.load %arg3[%c0_8, %c0_9] : memref<128x512xbf16, #tpu.memory_space<vmem>>, vector<128x512xbf16>
    %c0_10 = arith.constant 0 : index
    %c0_11 = arith.constant 0 : index
    %11 = vector.load %arg9[%c0_10, %c0_11] : memref<8x128xf32, #tpu.memory_space<vmem>>, vector<8x128xf32>
    %c0_12 = arith.constant 0 : index
    %c0_13 = arith.constant 0 : index
    %12 = vector.load %arg10[%c0_12, %c0_13] : memref<8x128xf32, #tpu.memory_space<vmem>>, vector<8x128xf32>
    %c0_i32_14 = arith.constant 0 : i32
    %c8_i32 = arith.constant 8 : i32
    %13 = arith.muli %c0_i32_14, %c8_i32 : i32
    %14 = tpu.assume_multiple %13, 8 : i32
    %15 = arith.index_cast %14 : i32 to index
    %c0_15 = arith.constant 0 : index
    %16 = vector.load %arg8[%15, %c0_15] : memref<64x512xf32, #tpu.memory_space<vmem>>, vector<8x512xf32>
    %17 = arith.truncf %11 : vector<8x128xf32> to vector<8x128xbf16>
    %cst_16 = arith.constant dense<0.000000e+00> : vector<8x512xf32>
    %18 = tpu.matmul %17, %10, %cst_16 {dimension_numbers = #tpu.dot_dimension_numbers<[1], [0], [0], [1], [0, 0, 1, 1], [], []>} : vector<8x128xbf16>, vector<128x512xbf16>, vector<8x512xf32> -> vector<8x512xf32>
    %19 = arith.addf %16, %18 : vector<8x512xf32>
    %20 = vector.extract_strided_slice %19 {offsets = [0, 0], sizes = [8, 384], strides = [1, 1]} : vector<8x512xf32> to vector<8x384xf32>
    %21 = arith.negf %20 : vector<8x384xf32>
    %22 = math.exp %21 : vector<8x384xf32>
    %cst_17 = arith.constant 1.000000e+00 : f32
    %23 = vector.broadcast %cst_17 : f32 to vector<8x384xf32>
    %24 = arith.addf %23, %22 : vector<8x384xf32>
    %25 = arith.divf %23, %24 : vector<8x384xf32>
    %26 = vector.extract_strided_slice %25 {offsets = [0, 0], sizes = [8, 128], strides = [1, 1]} : vector<8x384xf32> to vector<8x128xf32>
    %27 = vector.extract_strided_slice %25 {offsets = [0, 128], sizes = [8, 128], strides = [1, 1]} : vector<8x384xf32> to vector<8x128xf32>
    %28 = vector.extract_strided_slice %25 {offsets = [0, 256], sizes = [8, 128], strides = [1, 1]} : vector<8x384xf32> to vector<8x128xf32>
    %29 = vector.extract_strided_slice %19 {offsets = [0, 384], sizes = [8, 128], strides = [1, 1]} : vector<8x512xf32> to vector<8x128xf32>
    %30 = math.tanh %29 : vector<8x128xf32>
    %31 = arith.mulf %27, %12 : vector<8x128xf32>
    %32 = arith.mulf %26, %30 : vector<8x128xf32>
    %33 = arith.addf %31, %32 : vector<8x128xf32>
    %34 = math.tanh %33 : vector<8x128xf32>
    %35 = arith.mulf %28, %34 : vector<8x128xf32>
    %c1_i32 = arith.constant 1 : i32
    %c8_i32_18 = arith.constant 8 : i32
    %36 = arith.muli %c1_i32, %c8_i32_18 : i32
    %37 = tpu.assume_multiple %36, 8 : i32
    %38 = arith.index_cast %37 : i32 to index
    %c0_19 = arith.constant 0 : index
    %39 = vector.load %arg8[%38, %c0_19] : memref<64x512xf32, #tpu.memory_space<vmem>>, vector<8x512xf32>
    %40 = arith.truncf %35 : vector<8x128xf32> to vector<8x128xbf16>
    %cst_20 = arith.constant dense<0.000000e+00> : vector<8x512xf32>
    %41 = tpu.matmul %40, %10, %cst_20 {dimension_numbers = #tpu.dot_dimension_numbers<[1], [0], [0], [1], [0, 0, 1, 1], [], []>} : vector<8x128xbf16>, vector<128x512xbf16>, vector<8x512xf32> -> vector<8x512xf32>
    %42 = arith.addf %39, %41 : vector<8x512xf32>
    %43 = vector.extract_strided_slice %42 {offsets = [0, 0], sizes = [8, 384], strides = [1, 1]} : vector<8x512xf32> to vector<8x384xf32>
    %44 = arith.negf %43 : vector<8x384xf32>
    %45 = math.exp %44 : vector<8x384xf32>
    %cst_21 = arith.constant 1.000000e+00 : f32
    %46 = vector.broadcast %cst_21 : f32 to vector<8x384xf32>
    %47 = arith.addf %46, %45 : vector<8x384xf32>
    %48 = arith.divf %46, %47 : vector<8x384xf32>
    %49 = vector.extract_strided_slice %48 {offsets = [0, 0], sizes = [8, 128], strides = [1, 1]} : vector<8x384xf32> to vector<8x128xf32>
    %50 = vector.extract_strided_slice %48 {offsets = [0, 128], sizes = [8, 128], strides = [1, 1]} : vector<8x384xf32> to vector<8x128xf32>
    %51 = vector.extract_strided_slice %48 {offsets = [0, 256], sizes = [8, 128], strides = [1, 1]} : vector<8x384xf32> to vector<8x128xf32>
    %52 = vector.extract_strided_slice %42 {offsets = [0, 384], sizes = [8, 128], strides = [1, 1]} : vector<8x512xf32> to vector<8x128xf32>
    %53 = math.tanh %52 : vector<8x128xf32>
    %54 = arith.mulf %50, %33 : vector<8x128xf32>
    %55 = arith.mulf %49, %53 : vector<8x128xf32>
    %56 = arith.addf %54, %55 : vector<8x128xf32>
    %57 = math.tanh %56 : vector<8x128xf32>
    %58 = arith.mulf %51, %57 : vector<8x128xf32>
    %c2_i32 = arith.constant 2 : i32
    %c8_i32_22 = arith.constant 8 : i32
    %59 = arith.muli %c2_i32, %c8_i32_22 : i32
    %60 = tpu.assume_multiple %59, 8 : i32
    %61 = arith.index_cast %60 : i32 to index
    %c0_23 = arith.constant 0 : index
    %62 = vector.load %arg8[%61, %c0_23] : memref<64x512xf32, #tpu.memory_space<vmem>>, vector<8x512xf32>
    %63 = arith.truncf %58 : vector<8x128xf32> to vector<8x128xbf16>
    %cst_24 = arith.constant dense<0.000000e+00> : vector<8x512xf32>
    %64 = tpu.matmul %63, %10, %cst_24 {dimension_numbers = #tpu.dot_dimension_numbers<[1], [0], [0], [1], [0, 0, 1, 1], [], []>} : vector<8x128xbf16>, vector<128x512xbf16>, vector<8x512xf32> -> vector<8x512xf32>
    %65 = arith.addf %62, %64 : vector<8x512xf32>
    %66 = vector.extract_strided_slice %65 {offsets = [0, 0], sizes = [8, 384], strides = [1, 1]} : vector<8x512xf32> to vector<8x384xf32>
    %67 = arith.negf %66 : vector<8x384xf32>
    %68 = math.exp %67 : vector<8x384xf32>
    %cst_25 = arith.constant 1.000000e+00 : f32
    %69 = vector.broadcast %cst_25 : f32 to vector<8x384xf32>
    %70 = arith.addf %69, %68 : vector<8x384xf32>
    %71 = arith.divf %69, %70 : vector<8x384xf32>
    %72 = vector.extract_strided_slice %71 {offsets = [0, 0], sizes = [8, 128], strides = [1, 1]} : vector<8x384xf32> to vector<8x128xf32>
    %73 = vector.extract_strided_slice %71 {offsets = [0, 128], sizes = [8, 128], strides = [1, 1]} : vector<8x384xf32> to vector<8x128xf32>
    %74 = vector.extract_strided_slice %71 {offsets = [0, 256], sizes = [8, 128], strides = [1, 1]} : vector<8x384xf32> to vector<8x128xf32>
    %75 = vector.extract_strided_slice %65 {offsets = [0, 384], sizes = [8, 128], strides = [1, 1]} : vector<8x512xf32> to vector<8x128xf32>
    %76 = math.tanh %75 : vector<8x128xf32>
    %77 = arith.mulf %73, %56 : vector<8x128xf32>
    %78 = arith.mulf %72, %76 : vector<8x128xf32>
    %79 = arith.addf %77, %78 : vector<8x128xf32>
    %80 = math.tanh %79 : vector<8x128xf32>
    %81 = arith.mulf %74, %80 : vector<8x128xf32>
    %c3_i32 = arith.constant 3 : i32
    %c8_i32_26 = arith.constant 8 : i32
    %82 = arith.muli %c3_i32, %c8_i32_26 : i32
    %83 = tpu.assume_multiple %82, 8 : i32
    %84 = arith.index_cast %83 : i32 to index
    %c0_27 = arith.constant 0 : index
    %85 = vector.load %arg8[%84, %c0_27] : memref<64x512xf32, #tpu.memory_space<vmem>>, vector<8x512xf32>
    %86 = arith.truncf %81 : vector<8x128xf32> to vector<8x128xbf16>
    %cst_28 = arith.constant dense<0.000000e+00> : vector<8x512xf32>
    %87 = tpu.matmul %86, %10, %cst_28 {dimension_numbers = #tpu.dot_dimension_numbers<[1], [0], [0], [1], [0, 0, 1, 1], [], []>} : vector<8x128xbf16>, vector<128x512xbf16>, vector<8x512xf32> -> vector<8x512xf32>
    %88 = arith.addf %85, %87 : vector<8x512xf32>
    %89 = vector.extract_strided_slice %88 {offsets = [0, 0], sizes = [8, 384], strides = [1, 1]} : vector<8x512xf32> to vector<8x384xf32>
    %90 = arith.negf %89 : vector<8x384xf32>
    %91 = math.exp %90 : vector<8x384xf32>
    %cst_29 = arith.constant 1.000000e+00 : f32
    %92 = vector.broadcast %cst_29 : f32 to vector<8x384xf32>
    %93 = arith.addf %92, %91 : vector<8x384xf32>
    %94 = arith.divf %92, %93 : vector<8x384xf32>
    %95 = vector.extract_strided_slice %94 {offsets = [0, 0], sizes = [8, 128], strides = [1, 1]} : vector<8x384xf32> to vector<8x128xf32>
    %96 = vector.extract_strided_slice %94 {offsets = [0, 128], sizes = [8, 128], strides = [1, 1]} : vector<8x384xf32> to vector<8x128xf32>
    %97 = vector.extract_strided_slice %94 {offsets = [0, 256], sizes = [8, 128], strides = [1, 1]} : vector<8x384xf32> to vector<8x128xf32>
    %98 = vector.extract_strided_slice %88 {offsets = [0, 384], sizes = [8, 128], strides = [1, 1]} : vector<8x512xf32> to vector<8x128xf32>
    %99 = math.tanh %98 : vector<8x128xf32>
    %100 = arith.mulf %96, %79 : vector<8x128xf32>
    %101 = arith.mulf %95, %99 : vector<8x128xf32>
    %102 = arith.addf %100, %101 : vector<8x128xf32>
    %103 = math.tanh %102 : vector<8x128xf32>
    %104 = arith.mulf %97, %103 : vector<8x128xf32>
    %c4_i32 = arith.constant 4 : i32
    %c8_i32_30 = arith.constant 8 : i32
    %105 = arith.muli %c4_i32, %c8_i32_30 : i32
    %106 = tpu.assume_multiple %105, 8 : i32
    %107 = arith.index_cast %106 : i32 to index
    %c0_31 = arith.constant 0 : index
    %108 = vector.load %arg8[%107, %c0_31] : memref<64x512xf32, #tpu.memory_space<vmem>>, vector<8x512xf32>
    %109 = arith.truncf %104 : vector<8x128xf32> to vector<8x128xbf16>
    %cst_32 = arith.constant dense<0.000000e+00> : vector<8x512xf32>
    %110 = tpu.matmul %109, %10, %cst_32 {dimension_numbers = #tpu.dot_dimension_numbers<[1], [0], [0], [1], [0, 0, 1, 1], [], []>} : vector<8x128xbf16>, vector<128x512xbf16>, vector<8x512xf32> -> vector<8x512xf32>
    %111 = arith.addf %108, %110 : vector<8x512xf32>
    %112 = vector.extract_strided_slice %111 {offsets = [0, 0], sizes = [8, 384], strides = [1, 1]} : vector<8x512xf32> to vector<8x384xf32>
    %113 = arith.negf %112 : vector<8x384xf32>
    %114 = math.exp %113 : vector<8x384xf32>
    %cst_33 = arith.constant 1.000000e+00 : f32
    %115 = vector.broadcast %cst_33 : f32 to vector<8x384xf32>
    %116 = arith.addf %115, %114 : vector<8x384xf32>
    %117 = arith.divf %115, %116 : vector<8x384xf32>
    %118 = vector.extract_strided_slice %117 {offsets = [0, 0], sizes = [8, 128], strides = [1, 1]} : vector<8x384xf32> to vector<8x128xf32>
    %119 = vector.extract_strided_slice %117 {offsets = [0, 128], sizes = [8, 128], strides = [1, 1]} : vector<8x384xf32> to vector<8x128xf32>
    %120 = vector.extract_strided_slice %117 {offsets = [0, 256], sizes = [8, 128], strides = [1, 1]} : vector<8x384xf32> to vector<8x128xf32>
    %121 = vector.extract_strided_slice %111 {offsets = [0, 384], sizes = [8, 128], strides = [1, 1]} : vector<8x512xf32> to vector<8x128xf32>
    %122 = math.tanh %121 : vector<8x128xf32>
    %123 = arith.mulf %119, %102 : vector<8x128xf32>
    %124 = arith.mulf %118, %122 : vector<8x128xf32>
    %125 = arith.addf %123, %124 : vector<8x128xf32>
    %126 = math.tanh %125 : vector<8x128xf32>
    %127 = arith.mulf %120, %126 : vector<8x128xf32>
    %c5_i32 = arith.constant 5 : i32
    %c8_i32_34 = arith.constant 8 : i32
    %128 = arith.muli %c5_i32, %c8_i32_34 : i32
    %129 = tpu.assume_multiple %128, 8 : i32
    %130 = arith.index_cast %129 : i32 to index
    %c0_35 = arith.constant 0 : index
    %131 = vector.load %arg8[%130, %c0_35] : memref<64x512xf32, #tpu.memory_space<vmem>>, vector<8x512xf32>
    %132 = arith.truncf %127 : vector<8x128xf32> to vector<8x128xbf16>
    %cst_36 = arith.constant dense<0.000000e+00> : vector<8x512xf32>
    %133 = tpu.matmul %132, %10, %cst_36 {dimension_numbers = #tpu.dot_dimension_numbers<[1], [0], [0], [1], [0, 0, 1, 1], [], []>} : vector<8x128xbf16>, vector<128x512xbf16>, vector<8x512xf32> -> vector<8x512xf32>
    %134 = arith.addf %131, %133 : vector<8x512xf32>
    %135 = vector.extract_strided_slice %134 {offsets = [0, 0], sizes = [8, 384], strides = [1, 1]} : vector<8x512xf32> to vector<8x384xf32>
    %136 = arith.negf %135 : vector<8x384xf32>
    %137 = math.exp %136 : vector<8x384xf32>
    %cst_37 = arith.constant 1.000000e+00 : f32
    %138 = vector.broadcast %cst_37 : f32 to vector<8x384xf32>
    %139 = arith.addf %138, %137 : vector<8x384xf32>
    %140 = arith.divf %138, %139 : vector<8x384xf32>
    %141 = vector.extract_strided_slice %140 {offsets = [0, 0], sizes = [8, 128], strides = [1, 1]} : vector<8x384xf32> to vector<8x128xf32>
    %142 = vector.extract_strided_slice %140 {offsets = [0, 128], sizes = [8, 128], strides = [1, 1]} : vector<8x384xf32> to vector<8x128xf32>
    %143 = vector.extract_strided_slice %140 {offsets = [0, 256], sizes = [8, 128], strides = [1, 1]} : vector<8x384xf32> to vector<8x128xf32>
    %144 = vector.extract_strided_slice %134 {offsets = [0, 384], sizes = [8, 128], strides = [1, 1]} : vector<8x512xf32> to vector<8x128xf32>
    %145 = math.tanh %144 : vector<8x128xf32>
    %146 = arith.mulf %142, %125 : vector<8x128xf32>
    %147 = arith.mulf %141, %145 : vector<8x128xf32>
    %148 = arith.addf %146, %147 : vector<8x128xf32>
    %149 = math.tanh %148 : vector<8x128xf32>
    %150 = arith.mulf %143, %149 : vector<8x128xf32>
    %c6_i32 = arith.constant 6 : i32
    %c8_i32_38 = arith.constant 8 : i32
    %151 = arith.muli %c6_i32, %c8_i32_38 : i32
    %152 = tpu.assume_multiple %151, 8 : i32
    %153 = arith.index_cast %152 : i32 to index
    %c0_39 = arith.constant 0 : index
    %154 = vector.load %arg8[%153, %c0_39] : memref<64x512xf32, #tpu.memory_space<vmem>>, vector<8x512xf32>
    %155 = arith.truncf %150 : vector<8x128xf32> to vector<8x128xbf16>
    %cst_40 = arith.constant dense<0.000000e+00> : vector<8x512xf32>
    %156 = tpu.matmul %155, %10, %cst_40 {dimension_numbers = #tpu.dot_dimension_numbers<[1], [0], [0], [1], [0, 0, 1, 1], [], []>} : vector<8x128xbf16>, vector<128x512xbf16>, vector<8x512xf32> -> vector<8x512xf32>
    %157 = arith.addf %154, %156 : vector<8x512xf32>
    %158 = vector.extract_strided_slice %157 {offsets = [0, 0], sizes = [8, 384], strides = [1, 1]} : vector<8x512xf32> to vector<8x384xf32>
    %159 = arith.negf %158 : vector<8x384xf32>
    %160 = math.exp %159 : vector<8x384xf32>
    %cst_41 = arith.constant 1.000000e+00 : f32
    %161 = vector.broadcast %cst_41 : f32 to vector<8x384xf32>
    %162 = arith.addf %161, %160 : vector<8x384xf32>
    %163 = arith.divf %161, %162 : vector<8x384xf32>
    %164 = vector.extract_strided_slice %163 {offsets = [0, 0], sizes = [8, 128], strides = [1, 1]} : vector<8x384xf32> to vector<8x128xf32>
    %165 = vector.extract_strided_slice %163 {offsets = [0, 128], sizes = [8, 128], strides = [1, 1]} : vector<8x384xf32> to vector<8x128xf32>
    %166 = vector.extract_strided_slice %163 {offsets = [0, 256], sizes = [8, 128], strides = [1, 1]} : vector<8x384xf32> to vector<8x128xf32>
    %167 = vector.extract_strided_slice %157 {offsets = [0, 384], sizes = [8, 128], strides = [1, 1]} : vector<8x512xf32> to vector<8x128xf32>
    %168 = math.tanh %167 : vector<8x128xf32>
    %169 = arith.mulf %165, %148 : vector<8x128xf32>
    %170 = arith.mulf %164, %168 : vector<8x128xf32>
    %171 = arith.addf %169, %170 : vector<8x128xf32>
    %172 = math.tanh %171 : vector<8x128xf32>
    %173 = arith.mulf %166, %172 : vector<8x128xf32>
    %c7_i32 = arith.constant 7 : i32
    %c8_i32_42 = arith.constant 8 : i32
    %174 = arith.muli %c7_i32, %c8_i32_42 : i32
    %175 = tpu.assume_multiple %174, 8 : i32
    %176 = arith.index_cast %175 : i32 to index
    %c0_43 = arith.constant 0 : index
    %177 = vector.load %arg8[%176, %c0_43] : memref<64x512xf32, #tpu.memory_space<vmem>>, vector<8x512xf32>
    %178 = arith.truncf %173 : vector<8x128xf32> to vector<8x128xbf16>
    %cst_44 = arith.constant dense<0.000000e+00> : vector<8x512xf32>
    %179 = tpu.matmul %178, %10, %cst_44 {dimension_numbers = #tpu.dot_dimension_numbers<[1], [0], [0], [1], [0, 0, 1, 1], [], []>} : vector<8x128xbf16>, vector<128x512xbf16>, vector<8x512xf32> -> vector<8x512xf32>
    %180 = arith.addf %177, %179 : vector<8x512xf32>
    %181 = vector.extract_strided_slice %180 {offsets = [0, 0], sizes = [8, 384], strides = [1, 1]} : vector<8x512xf32> to vector<8x384xf32>
    %182 = arith.negf %181 : vector<8x384xf32>
    %183 = math.exp %182 : vector<8x384xf32>
    %cst_45 = arith.constant 1.000000e+00 : f32
    %184 = vector.broadcast %cst_45 : f32 to vector<8x384xf32>
    %185 = arith.addf %184, %183 : vector<8x384xf32>
    %186 = arith.divf %184, %185 : vector<8x384xf32>
    %187 = vector.extract_strided_slice %186 {offsets = [0, 0], sizes = [8, 128], strides = [1, 1]} : vector<8x384xf32> to vector<8x128xf32>
    %188 = vector.extract_strided_slice %186 {offsets = [0, 128], sizes = [8, 128], strides = [1, 1]} : vector<8x384xf32> to vector<8x128xf32>
    %189 = vector.extract_strided_slice %186 {offsets = [0, 256], sizes = [8, 128], strides = [1, 1]} : vector<8x384xf32> to vector<8x128xf32>
    %190 = vector.extract_strided_slice %180 {offsets = [0, 384], sizes = [8, 128], strides = [1, 1]} : vector<8x512xf32> to vector<8x128xf32>
    %191 = math.tanh %190 : vector<8x128xf32>
    %192 = arith.mulf %188, %171 : vector<8x128xf32>
    %193 = arith.mulf %187, %191 : vector<8x128xf32>
    %194 = arith.addf %192, %193 : vector<8x128xf32>
    %195 = math.tanh %194 : vector<8x128xf32>
    %196 = arith.mulf %189, %195 : vector<8x128xf32>
    %c8_i32_46 = arith.constant 8 : i32
    %c0_47 = arith.constant 0 : index
    %c0_48 = arith.constant 0 : index
    %197 = vector.load %arg9[%c0_47, %c0_48] : memref<8x128xf32, #tpu.memory_space<vmem>>, vector<8x128xf32>
    tpu.vector_store %arg9[%c0_47, %c0_48], %196 {strides = array<i32>} : memref<8x128xf32, #tpu.memory_space<vmem>>, vector<8x128xf32>,
    %c0_49 = arith.constant 0 : index
    %c0_50 = arith.constant 0 : index
    %198 = vector.load %arg10[%c0_49, %c0_50] : memref<8x128xf32, #tpu.memory_space<vmem>>, vector<8x128xf32>
    tpu.vector_store %arg10[%c0_49, %c0_50], %194 {strides = array<i32>} : memref<8x128xf32, #tpu.memory_space<vmem>>, vector<8x128xf32>,
    %c0_i32_51 = arith.constant 0 : i32
    %199 = arith.cmpi eq, %arg0, %c0_i32_51 : i32
    %200 = arith.extui %199 : i1 to i32
    %c0_i32_52 = arith.constant 0 : i32
    %201 = arith.cmpi ne, %200, %c0_i32_52 : i32
    scf.if %201 {
      %202 = arith.truncf %196 : vector<8x128xf32> to vector<8x128xbf16>
      %c0_53 = arith.constant 0 : index
      %c0_54 = arith.constant 0 : index
      %203 = vector.load %arg5[%c0_53, %c0_54] : memref<128x5xbf16, #tpu.memory_space<vmem>>, vector<128x5xbf16>
      %cst_55 = arith.constant dense<0.000000e+00> : vector<8x5xf32>
      %204 = tpu.matmul %202, %203, %cst_55 {dimension_numbers = #tpu.dot_dimension_numbers<[1], [0], [0], [1], [0, 0, 1, 1], [], []>} : vector<8x128xbf16>, vector<128x5xbf16>, vector<8x5xf32> -> vector<8x5xf32>
      %c0_56 = arith.constant 0 : index
      %c0_57 = arith.constant 0 : index
      %205 = vector.load %arg6[%c0_56, %c0_57] : memref<1x5xf32, #tpu.memory_space<vmem>>, vector<1x5xf32>
      %206 = vector.broadcast %205 : vector<1x5xf32> to vector<8x5xf32>
      %207 = arith.addf %204, %206 : vector<8x5xf32>
      %cst_58 = arith.constant dense<0xFF800000> : vector<8xf32>
      %208 = vector.multi_reduction <maximumf>, %207, %cst_58 [1] : vector<8x5xf32> to vector<8xf32>
      %209 = vector.shape_cast %208 : vector<8xf32> to vector<8x1xf32>
      %210 = vector.broadcast %209 : vector<8x1xf32> to vector<8x5xf32>
      %211 = arith.subf %207, %210 : vector<8x5xf32>
      %212 = math.exp %211 : vector<8x5xf32>
      %cst_59 = arith.constant dense<0.000000e+00> : vector<8xf32>
      %213 = vector.multi_reduction <add>, %212, %cst_59 [1] : vector<8x5xf32> to vector<8xf32>
      %214 = vector.shape_cast %213 : vector<8xf32> to vector<8x1xf32>
      %215 = vector.broadcast %214 : vector<8x1xf32> to vector<8x5xf32>
      %216 = arith.divf %212, %215 : vector<8x5xf32>
      %c0_60 = arith.constant 0 : index
      %c0_61 = arith.constant 0 : index
      %217 = vector.load %arg7[%c0_60, %c0_61] : memref<8x5xf32, #tpu.memory_space<vmem>>, vector<8x5xf32>
      tpu.vector_store %arg7[%c0_60, %c0_61], %216 {strides = array<i32>} : memref<8x5xf32, #tpu.memory_space<vmem>>, vector<8x5xf32>,
    } else {
    }
    return
  }
  func.func @transform_0(%arg0: i32) -> (i32, i32) {
    %c0_i32 = arith.constant 0 : i32
    %c0_i32_0 = arith.constant 0 : i32
    return %arg0, %c0_i32 : i32, i32
  }
  func.func @transform_1(%arg0: i32) -> (i32, i32) {
    %c0_i32 = arith.constant 0 : i32
    %c0_i32_0 = arith.constant 0 : i32
    %c0_i32_1 = arith.constant 0 : i32
    return %c0_i32, %c0_i32_0 : i32, i32
  }
  func.func @transform_2(%arg0: i32) -> (i32, i32) {
    %c0_i32 = arith.constant 0 : i32
    %c0_i32_0 = arith.constant 0 : i32
    %c0_i32_1 = arith.constant 0 : i32
    return %c0_i32, %c0_i32_0 : i32, i32
  }
  func.func @transform_3(%arg0: i32) -> (i32, i32) {
    %c0_i32 = arith.constant 0 : i32
    %c0_i32_0 = arith.constant 0 : i32
    %c0_i32_1 = arith.constant 0 : i32
    return %c0_i32, %c0_i32_0 : i32, i32
  }
  func.func @transform_4(%arg0: i32) -> (i32, i32) {
    %c0_i32 = arith.constant 0 : i32
    %c0_i32_0 = arith.constant 0 : i32
    %c0_i32_1 = arith.constant 0 : i32
    return %c0_i32, %c0_i32_0 : i32, i32
  }
  func.func @transform_5(%arg0: i32) -> (i32, i32) {
    %c0_i32 = arith.constant 0 : i32
    %c0_i32_0 = arith.constant 0 : i32
    %c0_i32_1 = arith.constant 0 : i32
    return %c0_i32, %c0_i32_0 : i32, i32
  }
  func.func @transform_6(%arg0: i32) -> (i32, i32) {
    %c0_i32 = arith.constant 0 : i32
    %c0_i32_0 = arith.constant 0 : i32
    %c0_i32_1 = arith.constant 0 : i32
    return %c0_i32, %c0_i32_0 : i32, i32
  }
}

</mosaic_0001>

<bundles_post_ra>
// kernel: lstm_model_forward.1
= control target key start
LH: loop header
LB: loop body
LE: loop exit
PB: predicated region body
PF: predicated region fallthrough
CT: control target
= control target key end

     0   :  { %vm165_vm0 = vcmask 523264   ;;  %s3055_s0 = inlined_call_operand.vmem [shape: bf16[64,64], index: 0, kind: input, shape index: {}]   ;;  %s3056_s1 = inlined_call_operand.vmem [shape: bf16[64,512], index: 1, kind: input, shape index: {}]   ;;  %s3057_s2 = inlined_call_operand.vmem [shape: bf16[128,512], index: 2, kind: input, shape index: {}]   ;;  %s3058_s3 = inlined_call_operand.vmem [shape: f32[1,512], index: 3, kind: input, shape index: {}]   ;;  %s3059_s4 = inlined_call_operand.vmem [shape: bf16[128,5], index: 4, kind: input, shape index: {}]   ;;  %s3060_s5 = inlined_call_operand.vmem [shape: f32[1,5], index: 5, kind: input, shape index: {}]   ;;  %s3061_s6 = inlined_call_operand.hbm [shape: f32[8,5], index: 6, kind: output, shape index: {}]  }
   0x1   :  { %v1738_v0 = vld [vmem:[%s3056_s1 + $0x60] sm:$0xf]  ;;  %v1970_v1 = vld [vmem:[%s3056_s1 + $0x6c] sm:$0xf0]  ;;  %v1746_v2 = vld [vmem:[%s3056_s1 + $0x68] sm:$0xf] }
   0x2   :  { %v1739_v3 = vor.u32 %v1970_v1, %v1738_v0  ;;  %v1971_v4 = vld [vmem:[%s3056_s1 + $0x74] sm:$0xf0]  ;;  %v1969_v5 = vld [vmem:[%s3056_s1 + $0x6c] sm:$0xf]  ;;  %v1748_v6 = vld [vmem:[%s3056_s1 + $0x78] sm:$0xf0] }
   0x3   :  { %v1747_v7 = vor.u32 %v1971_v4, %v1746_v2  ;;  %v1751_v8 = vor.u32 %v1969_v5, %v1748_v6  ;;  %v1722_v9 = vld [vmem:[%s3056_s1 + $0x40] sm:$0xf]  ;;  %v1966_v10 = vld [vmem:[%s3056_s1 + $0x4c] sm:$0xf0]  ;;  %v1730_v11 = vld [vmem:[%s3056_s1 + $0x48] sm:$0xf] }
   0x4   :  { %182 = vmatpush.bf16.msra.mxu0 %v1739_v3  ;;  %2012 = vmatpush.bf16.msra.mxu1 %v1739_v3  ;;  %v1723_v12 = vor.u32 %v1966_v10, %v1722_v9  ;;  %v1967_v13 = vld [vmem:[%s3056_s1 + $0x54] sm:$0xf0]  ;;  %v1965_v14 = vld [vmem:[%s3056_s1 + $0x4c] sm:$0xf]  ;;  %v1732_v15 = vld [vmem:[%s3056_s1 + $0x58] sm:$0xf0] }
   0x5   :  { %240 = vmatpush.bf16.msra.mxu2 %v1747_v7  ;;  %269 = vmatpush.bf16.msra.mxu3 %v1751_v8  ;;  %v1731_v16 = vor.u32 %v1967_v13, %v1730_v11  ;;  %v1735_v17 = vor.u32 %v1965_v14, %v1732_v15  ;;  %v1706_v18 = vld [vmem:[%s3056_s1 + $0x20] sm:$0xf]  ;;  %v1962_v19 = vld [vmem:[%s3056_s1 + $0x2c] sm:$0xf0]  ;;  %v1714_v20 = vld [vmem:[%s3056_s1 + $0x28] sm:$0xf] }
   0x6   :  { %v1963_v21 = vld [vmem:[%s3056_s1 + $0x34] sm:$0xf0]  ;;  %v1961_v22 = vld [vmem:[%s3056_s1 + $0x2c] sm:$0xf]  ;;  %v1716_v23 = vld [vmem:[%s3056_s1 + $0x38] sm:$0xf0]  ;;  %v1707_v24 = vor.u32 %v1962_v19, %v1706_v18 }
   0x7   :  { %v1715_v25 = vor.u32 %v1963_v21, %v1714_v20  ;;  %v1719_v26 = vor.u32 %v1961_v22, %v1716_v23  ;;  %v1690_v27 = vld [vmem:[%s3056_s1] sm:$0xf]  ;;  %v1958_v28 = vld [vmem:[%s3056_s1 + $0xc] sm:$0xf0]  ;;  %v1698_v29 = vld [vmem:[%s3056_s1 + $0x8] sm:$0xf] }
   0x8   :  { %183 = vmatpush.bf16.msra.mxu0 %v1723_v12  ;;  %2013 = vmatpush.bf16.msra.mxu1 %v1723_v12  ;;  %v1959_v30 = vld [vmem:[%s3056_s1 + $0x14] sm:$0xf0]  ;;  %v1957_v31 = vld [vmem:[%s3056_s1 + $0xc] sm:$0xf]  ;;  %v1700_v32 = vld [vmem:[%s3056_s1 + $0x18] sm:$0xf0]  ;;  %v1691_v35 = vor.u32 %v1958_v28, %v1690_v27 }
   0x9   :  { %241 = vmatpush.bf16.msra.mxu2 %v1731_v16  ;;  %270 = vmatpush.bf16.msra.mxu3 %v1735_v17  ;;  %v1968_v33 = vld [vmem:[%s3056_s1 + $0x64] sm:$0xf]  ;;  %v1740_v34 = vld [vmem:[%s3056_s1 + $0x70] sm:$0xf0]  ;;  %v1699_v36 = vor.u32 %v1959_v30, %v1698_v29  ;;  %v1703_v37 = vor.u32 %v1957_v31, %v1700_v32  ;;  %v2300_v39 = vld [vmem:[%s3055_s0 + $0x18] sm:$0xff] }
   0xa   :  { %v2295_v38 = vld [vmem:[%s3055_s0] sm:$0xff]  ;;  %v2002_v41 = vld [vmem:[%s3057_s2 + $0xec] sm:$0xf0]  ;;  %v1743_v42 = vor.u32 %v1968_v33, %v1740_v34  ;;  %v1724_v44 = vld [vmem:[%s3056_s1 + $0x50] sm:$0xf0] }
   0xb   :  { %v1882_v40 = vld [vmem:[%s3057_s2 + $0xe0] sm:$0xf]  ;;  %v1964_v43 = vld [vmem:[%s3056_s1 + $0x44] sm:$0xf]  ;;  %v1890_v46 = vld [vmem:[%s3057_s2 + $0xe8] sm:$0xf] }
   0xc   :  { %184 = vmatpush.bf16.msra.mxu0 %v1707_v24  ;;  %2014 = vmatpush.bf16.msra.mxu1 %v1707_v24  ;;  %v2314_v45 = vor.u32 %v2002_v41, %v1882_v40  ;;  %v1866_v47 = vld [vmem:[%s3057_s2 + $0xc0] sm:$0xf]  ;;  %v1998_v48 = vld [vmem:[%s3057_s2 + $0xcc] sm:$0xf0]  ;;  %v2003_v49 = vld [vmem:[%s3057_s2 + $0xf4] sm:$0xf0]  ;;  %v1727_v54 = vor.u32 %v1964_v43, %v1724_v44 }
   0xd   :  { %242 = vmatpush.bf16.msra.mxu2 %v1715_v25  ;;  %271 = vmatpush.bf16.msra.mxu3 %v1719_v26  ;;  %v1960_v50 = vld [vmem:[%s3056_s1 + $0x24] sm:$0xf]  ;;  %v1708_v51 = vld [vmem:[%s3056_s1 + $0x30] sm:$0xf0]  ;;  %v2334_v52 = vor.u32 %v2003_v49, %v1890_v46  ;;  %v1874_v53 = vld [vmem:[%s3057_s2 + $0xc8] sm:$0xf]  ;;  %v2340_v55 = vor.u32 %v1998_v48, %v1866_v47 }
   0xe   :  { %v1999_v56 = vld [vmem:[%s3057_s2 + $0xd4] sm:$0xf0]  ;;  %v2001_v57 = vld [vmem:[%s3057_s2 + $0xec] sm:$0xf]  ;;  %v1892_v58 = vld [vmem:[%s3057_s2 + $0xf8] sm:$0xf0]  ;;  %v1711_v2 = vor.u32 %v1960_v50, %v1708_v51 }
   0xf   :  { %v1850_v59 = vld [vmem:[%s3057_s2 + $0xa0] sm:$0xf]  ;;  %v1994_v60 = vld [vmem:[%s3057_s2 + $0xac] sm:$0xf0]  ;;  %v2361_v61 = vor.u32 %v2001_v57, %v1892_v58  ;;  %v1956_v62 = vld [vmem:[%s3056_s1 + $0x4] sm:$0xf]  ;;  %v2374_v0 = vor.u32 %v1999_v56, %v1874_v53 }
  0x10   :  { %185 = vmatpush.bf16.msra.mxu0 %v1691_v35  ;;  %2015 = vmatpush.bf16.msra.mxu1 %v1691_v35  ;;  %v1692_v63 = vld [vmem:[%s3056_s1 + $0x10] sm:$0xf0]  ;;  %v1858_v1 = vld [vmem:[%s3057_s2 + $0xa8] sm:$0xf]  ;;  %v2381_v3 = vor.u32 %v1994_v60, %v1850_v59  ;;  %v1995_v4 = vld [vmem:[%s3057_s2 + $0xb4] sm:$0xf0] }
  0x11   :  { %243 = vmatpush.bf16.msra.mxu2 %v1699_v36  ;;  %272 = vmatpush.bf16.msra.mxu3 %v1703_v37  ;;  %v1997_v5 = vld [vmem:[%s3057_s2 + $0xcc] sm:$0xf]  ;;  %v1876_v6 = vld [vmem:[%s3057_s2 + $0xd8] sm:$0xf0]  ;;  %v2000_v7 = vld [vmem:[%s3057_s2 + $0xe4] sm:$0xf]  ;;  %v2413_v14 = vor.u32 %v1995_v4, %v1858_v1  ;;  %v1695_v18 = vor.u32 %v1956_v62, %v1692_v63 }
  0x12   :  { %v1834_v8 = vld [vmem:[%s3057_s2 + $0x80] sm:$0xf]  ;;  %v1990_v9 = vld [vmem:[%s3057_s2 + $0x8c] sm:$0xf0]  ;;  %v2401_v10 = vor.u32 %v1997_v5, %v1876_v6  ;;  %v1884_v11 = vld [vmem:[%s3057_s2 + $0xf0] sm:$0xf0] }
  0x13   :  { %1752 = vmatmul.msk.bf16.vlgmr.msra.gmra.mxu0 %vm165_vm0, %v2295_v38  ;;  %1755 = vmatmul.msk.bf16.vlgmr.msra.gmra.mxu1 %vm165_vm0, %v2300_v39  ;;  %v1993_v12 = vld [vmem:[%s3057_s2 + $0xac] sm:$0xf]  ;;  %v1860_v13 = vld [vmem:[%s3057_s2 + $0xb8] sm:$0xf0]  ;;  %v1842_v16 = vld [vmem:[%s3057_s2 + $0x88] sm:$0xf]  ;;  %v2425_v19 = vor.u32 %v1990_v9, %v1834_v8 }
  0x14   :  { %211 = vmatpush.bf16.msrb.mxu1 %v1743_v42  ;;  %528 = vmatpush.bf16.msrb.mxu0 %v2314_v45  ;;  %v2416_v15 = vor.u32 %v1993_v12, %v1860_v13  ;;  %v1991_v17 = vld [vmem:[%s3057_s2 + $0x94] sm:$0xf0]  ;;  %v1989_v20 = vld [vmem:[%s3057_s2 + $0x8c] sm:$0xf]  ;;  %v1844_v21 = vld [vmem:[%s3057_s2 + $0x98] sm:$0xf0] }
  0x15   :  { %1760 = vmatmul.msk.bf16.vlgmr.msra.gmra.mxu2 %vm165_vm0, %v2295_v38  ;;  %1764 = vmatmul.msk.bf16.vlgmr.msra.gmra.mxu3 %vm165_vm0, %v2295_v38 }
  0x16   :  { %554 = vmatpush.bf16.msrb.mxu2 %v2334_v52  ;;  %567 = vmatpush.bf16.msrb.mxu3 %v2361_v61 }
  0x18   :  { %212 = vmatpush.bf16.msrb.mxu1 %v1727_v54  ;;  %529 = vmatpush.bf16.msrb.mxu0 %v2340_v55 }
  0x1a   :  { %555 = vmatpush.bf16.msrb.mxu2 %v2374_v0  ;;  %568 = vmatpush.bf16.msrb.mxu3 %v2401_v10 }
  0x1c   :  { %213 = vmatpush.bf16.msrb.mxu1 %v1711_v2  ;;  %530 = vmatpush.bf16.msrb.mxu0 %v2381_v3 }
  0x1d   :  { %11 = vsyncpa [#allocation6], 0  ;;  %v2433_v22 = vor.u32 %v2000_v7, %v1884_v11  ;;  %v1818_v23 = vld [vmem:[%s3057_s2 + $0x60] sm:$0xf]  ;;  %v1986_v24 = vld [vmem:[%s3057_s2 + $0x6c] sm:$0xf0]  ;;  %v2443_v25 = vor.u32 %v1991_v17, %v1842_v16  ;;  %v2445_v26 = vor.u32 %v1989_v20, %v1844_v21 }
  0x1e   :  { %556 = vmatpush.bf16.msrb.mxu2 %v2413_v14  ;;  %569 = vmatpush.bf16.msrb.mxu3 %v2416_v15  ;;  %v1996_v27 = vld [vmem:[%s3057_s2 + $0xc4] sm:$0xf]  ;;  %v1868_v28 = vld [vmem:[%s3057_s2 + $0xd0] sm:$0xf0]  ;;  %v2454_v29 = vor.u32 %v1986_v24, %v1818_v23  ;;  %v2459_v30 = vld [vmem:[%s3055_s0 + $0x8] sm:$0xff] }
  0x1f   :  { %v1802_v31 = vld [vmem:[%s3057_s2 + $0x40] sm:$0xf]  ;;  %v1982_v32 = vld [vmem:[%s3057_s2 + $0x4c] sm:$0xf0]  ;;  %v2468_v33 = vor.u32 %v1996_v27, %v1868_v28  ;;  %v1992_v34 = vld [vmem:[%s3057_s2 + $0xa4] sm:$0xf] }
  0x20   :  { %214 = vmatpush.bf16.msrb.mxu1 %v1695_v18  ;;  %531 = vmatpush.bf16.msrb.mxu0 %v2425_v19  ;;  %v1852_v35 = vld [vmem:[%s3057_s2 + $0xb0] sm:$0xf0]  ;;  %v2479_v36 = vor.u32 %v1982_v32, %v1802_v31  ;;  %v1826_v37 = vld [vmem:[%s3057_s2 + $0x68] sm:$0xf]  ;;  %v1987_v40 = vld [vmem:[%s3057_s2 + $0x74] sm:$0xf0] }
  0x21   :  { %v1985_v41 = vld [vmem:[%s3057_s2 + $0x6c] sm:$0xf]  ;;  %v1786_v42 = vld [vmem:[%s3057_s2 + $0x20] sm:$0xf]  ;;  %v1978_v43 = vld [vmem:[%s3057_s2 + $0x2c] sm:$0xf0]  ;;  %v2500_v44 = vor.u32 %v1987_v40, %v1826_v37  ;;  %v2521_v50 = vor.u32 %v1992_v34, %v1852_v35 }
  0x22   :  { %557 = vmatpush.bf16.msrb.mxu2 %v2443_v25  ;;  %570 = vmatpush.bf16.msrb.mxu3 %v2445_v26  ;;  %v1828_v46 = vld [vmem:[%s3057_s2 + $0x78] sm:$0xf0]  ;;  %v1836_v47 = vld [vmem:[%s3057_s2 + $0x90] sm:$0xf0]  ;;  %v1810_v49 = vld [vmem:[%s3057_s2 + $0x48] sm:$0xf]  ;;  %v2534_v56 = vor.u32 %v1978_v43, %v1786_v42 }
  0x23   :  { %1753 = vmatmul.msk.bf16.gmra.mxu0 %vm165_vm0, %v2459_v30  ;;  %1756 = vmatmul.msk.bf16.vlgmr.msrb.gmra.mxu1 %vm165_vm0, %v2295_v38  ;;  %v1988_v38 = vld [vmem:[%s3057_s2 + $0x84] sm:$0xf]  ;;  %v2515_v48 = vor.u32 %v1985_v41, %v1828_v46  ;;  %v1983_v51 = vld [vmem:[%s3057_s2 + $0x54] sm:$0xf0]  ;;  %v1981_v53 = vld [vmem:[%s3057_s2 + $0x4c] sm:$0xf] }
  0x24   :  { %541 = vmatpush.bf16.msra.mxu1 %v2433_v22  ;;  %532 = vmatpush.bf16.msrb.mxu0 %v2454_v29  ;;  %v1812_v54 = vld [vmem:[%s3057_s2 + $0x58] sm:$0xf0]  ;;  %v1770_v57 = vld [vmem:[%s3057_s2] sm:$0xf]  ;;  %v1974_v58 = vld [vmem:[%s3057_s2 + $0xc] sm:$0xf0]  ;;  %v2543_v59 = vor.u32 %v1983_v51, %v1810_v49  ;;  %v2560_v4 = vor.u32 %v1988_v38, %v1836_v47 }
  0x25   :  { %1761 = vmatmul.msk.bf16.gmra.mxu2 %vm165_vm0, %v2459_v30  ;;  %1765 = vmatmul.msk.bf16.gmra.mxu3 %vm165_vm0, %v2459_v30  ;;  %v2545_v60 = vor.u32 %v1981_v53, %v1812_v54  ;;  %v1794_v62 = vld [vmem:[%s3057_s2 + $0x28] sm:$0xf]  ;;  %v1979_v63 = vld [vmem:[%s3057_s2 + $0x34] sm:$0xf0]  ;;  %v1977_v1 = vld [vmem:[%s3057_s2 + $0x2c] sm:$0xf]  ;;  %v2569_v7 = vor.u32 %v1974_v58, %v1770_v57 }
  0x26   :  { %558 = vmatpush.bf16.msrb.mxu2 %v2500_v44  ;;  %571 = vmatpush.bf16.msrb.mxu3 %v2515_v48  ;;  %v1796_v2 = vld [vmem:[%s3057_s2 + $0x38] sm:$0xf0]  ;;  %v1984_v5 = vld [vmem:[%s3057_s2 + $0x64] sm:$0xf]  ;;  %v2566_v6 = vor.u32 %v1979_v63, %v1794_v62  ;;  %v1820_v8 = vld [vmem:[%s3057_s2 + $0x70] sm:$0xf0] }
  0x27   :  { %v2575_v9 = vor.u32 %v1977_v1, %v1796_v2  ;;  %v1778_v11 = vld [vmem:[%s3057_s2 + $0x8] sm:$0xf]  ;;  %v1975_v12 = vld [vmem:[%s3057_s2 + $0x14] sm:$0xf0]  ;;  %v1973_v13 = vld [vmem:[%s3057_s2 + $0xc] sm:$0xf]  ;;  %v2590_v17 = vor.u32 %v1984_v5, %v1820_v8 }
  0x28   :  { %542 = vmatpush.bf16.msra.mxu1 %v2468_v33  ;;  %533 = vmatpush.bf16.msrb.mxu0 %v2479_v36  ;;  %v1780_v16 = vld [vmem:[%s3057_s2 + $0x18] sm:$0xf0]  ;;  %v2593_v18 = vor.u32 %v1975_v12, %v1778_v11  ;;  %v1980_v20 = vld [vmem:[%s3057_s2 + $0x44] sm:$0xf]  ;;  %v1804_v21 = vld [vmem:[%s3057_s2 + $0x50] sm:$0xf0] }
  0x29   :  { %v2603_v23 = vor.u32 %v1973_v13, %v1780_v16  ;;  %v1954_v24 = vld [vmem:[%s3055_s0 + $0x10] sm:$0xff]  ;;  %v2610_v27 = vor.u32 %v1980_v20, %v1804_v21  ;;  %v1976_v28 = vld [vmem:[%s3057_s2 + $0x24] sm:$0xf]  ;;  %v2177_v37 = vmov 0.0|0.0   ;;  %s1656_s0 = sshll.u32 %s3061_s6, 4  ;;  %s1657_s0 = int_to_ptr.hbm [resolvable:$true] %s1656_s0 }
  0x2a   :  { %559 = vmatpush.bf16.msrb.mxu2 %v2543_v59  ;;  %572 = vmatpush.bf16.msrb.mxu3 %v2545_v60  ;;  %v1788_v31 = vld [vmem:[%s3057_s2 + $0x30] sm:$0xf0] }
  0x2b   :  { %v2627_v32 = vor.u32 %v1976_v28, %v1788_v31  ;;  %v1772_v34 = vld [vmem:[%s3057_s2 + $0x10] sm:$0xf0] }
  0x2c   :  { %543 = vmatpush.bf16.msra.mxu1 %v2521_v50  ;;  %534 = vmatpush.bf16.msrb.mxu0 %v2534_v56 }
  0x2e   :  { %560 = vmatpush.bf16.msrb.mxu2 %v2566_v6  ;;  %573 = vmatpush.bf16.msrb.mxu3 %v2575_v9 }
  0x30   :  { %544 = vmatpush.bf16.msra.mxu1 %v2560_v4  ;;  %535 = vmatpush.bf16.msrb.mxu0 %v2569_v7 }
  0x32   :  { %561 = vmatpush.bf16.msrb.mxu2 %v2593_v18  ;;  %574 = vmatpush.bf16.msrb.mxu3 %v2603_v23 }
  0x33   :  { %1754 = vmatmul.msk.bf16.gmra.mxu0 %vm165_vm0, %v1954_v24  ;;  %1757 = vmatmul.msk.bf16.gmra.mxu1 %vm165_vm0, %v2459_v30  ;;  %v1972_v30 = vld [vmem:[%s3057_s2 + $0x4] sm:$0xf] }
  0x34   :  { %655 = vmatpush.bf16.msra.mxu0 %v2314_v45  ;;  %545 = vmatpush.bf16.msra.mxu1 %v2590_v17  ;;  %v2639_v35 = vor.u32 %v1972_v30, %v1772_v34 }
  0x35   :  { %1762 = vmatmul.msk.bf16.gmra.mxu2 %vm165_vm0, %v1954_v24  ;;  %1766 = vmatmul.msk.bf16.gmra.mxu3 %vm165_vm0, %v1954_v24 }
  0x36   :  { %681 = vmatpush.bf16.msra.mxu2 %v2334_v52  ;;  %694 = vmatpush.bf16.msra.mxu3 %v2361_v61 }
  0x38   :  { %546 = vmatpush.bf16.msra.mxu1 %v2610_v27  ;;  %656 = vmatpush.bf16.msra.mxu0 %v2340_v55 }
  0x3a   :  { %682 = vmatpush.bf16.msra.mxu2 %v2374_v0  ;;  %695 = vmatpush.bf16.msra.mxu3 %v2401_v10 }
  0x3c   :  { %547 = vmatpush.bf16.msra.mxu1 %v2627_v32  ;;  %657 = vmatpush.bf16.msra.mxu0 %v2381_v3 }
  0x3e   :  { %683 = vmatpush.bf16.msra.mxu2 %v2413_v14  ;;  %696 = vmatpush.bf16.msra.mxu3 %v2416_v15 }
  0x40   :  { %548 = vmatpush.bf16.msra.mxu1 %v2639_v35  ;;  %658 = vmatpush.bf16.msra.mxu0 %v2425_v19 }
  0x42   :  { %684 = vmatpush.bf16.msra.mxu2 %v2443_v25  ;;  %697 = vmatpush.bf16.msra.mxu3 %v2445_v26 }
  0x43   :  { %1758 = vmatmul.msk.bf16.gmra.mxu1 %vm165_vm0, %v1954_v24  ;;  %536 = vmatmul.bf16.vlgmr.msrb.gmra.mxu0 %v2177_v37 }
  0x44   :  { %668 = vmatpush.bf16.msrb.mxu1 %v2433_v22  ;;  %659 = vmatpush.bf16.msra.mxu0 %v2454_v29 }
  0x45   :  { %1763 = vmatmul.msk.bf16.gmra.mxu2 %vm165_vm0, %v2300_v39  ;;  %1767 = vmatmul.msk.bf16.gmra.mxu3 %vm165_vm0, %v2300_v39 }
  0x46   :  { %685 = vmatpush.bf16.msra.mxu2 %v2500_v44  ;;  %698 = vmatpush.bf16.msra.mxu3 %v2515_v48 }
  0x48   :  { %669 = vmatpush.bf16.msrb.mxu1 %v2468_v33  ;;  %660 = vmatpush.bf16.msra.mxu0 %v2479_v36 }
  0x4a   :  { %686 = vmatpush.bf16.msra.mxu2 %v2543_v59  ;;  %699 = vmatpush.bf16.msra.mxu3 %v2545_v60 }
  0x4c   :  { %670 = vmatpush.bf16.msrb.mxu1 %v2521_v50  ;;  %661 = vmatpush.bf16.msra.mxu0 %v2534_v56 }
  0x4e   :  { %687 = vmatpush.bf16.msra.mxu2 %v2566_v6  ;;  %700 = vmatpush.bf16.msra.mxu3 %v2575_v9 }
  0x50   :  { %671 = vmatpush.bf16.msrb.mxu1 %v2560_v4  ;;  %662 = vmatpush.bf16.msra.mxu0 %v2569_v7 }
  0x52   :  { %688 = vmatpush.bf16.msra.mxu2 %v2593_v18  ;;  %701 = vmatpush.bf16.msra.mxu3 %v2603_v23 }
  0x53   :  { %1759 = vmatmul.msk.bf16.gmra.mxu1 %vm165_vm0, %v2300_v39  ;;  %v55_v39 = vld [vmem:[%s3058_s3] sm:$0xf] }
  0x54   :  { %672 = vmatpush.bf16.msrb.mxu1 %v2590_v17  ;;  %782 = vmatpush.bf16.msrb.mxu0 %v2314_v45  ;;  %v2711_v40 = vperm.slane %v55_v39, 0  ;;  %v2725_v53 = vperm.slane %v55_v39, 2  ;;  %v60_v54 = vperm.slane %v55_v39, 3  ;;  %v2737_v8 = vperm.slane %v55_v39, 1 }
  0x55   :  { %562 = vmatmul.bf16.vlgmr.msrb.gmra.mxu2 %v2177_v37  ;;  %575 = vmatmul.bf16.vlgmr.msrb.gmra.mxu3 %v2177_v37 }
  0x56   :  { %808 = vmatpush.bf16.msrb.mxu2 %v2334_v52  ;;  %821 = vmatpush.bf16.msrb.mxu3 %v2361_v61  ;;  %3063 = vst [vmem:[#allocation8_spill] sm:$0xff] %v2711_v40 }
  0x58   :  { %673 = vmatpush.bf16.msrb.mxu1 %v2610_v27  ;;  %783 = vmatpush.bf16.msrb.mxu0 %v2340_v55 }
  0x5a   :  { %809 = vmatpush.bf16.msrb.mxu2 %v2374_v0  ;;  %822 = vmatpush.bf16.msrb.mxu3 %v2401_v10 }
  0x5c   :  { %674 = vmatpush.bf16.msrb.mxu1 %v2627_v32  ;;  %784 = vmatpush.bf16.msrb.mxu0 %v2381_v3 }
  0x5e   :  { %810 = vmatpush.bf16.msrb.mxu2 %v2413_v14  ;;  %823 = vmatpush.bf16.msrb.mxu3 %v2416_v15 }
  0x60   :  { %675 = vmatpush.bf16.msrb.mxu1 %v2639_v35  ;;  %785 = vmatpush.bf16.msrb.mxu0 %v2425_v19 }
  0x62   :  { %811 = vmatpush.bf16.msrb.mxu2 %v2443_v25  ;;  %824 = vmatpush.bf16.msrb.mxu3 %v2445_v26 }
  0x63   :  { %549 = vmatmul.bf16.vlgmr.msra.gmra.mxu1 %v2177_v37 }
  0x64   :  { %786 = vmatpush.bf16.msrb.mxu0 %v2454_v29  ;;  %795 = vmatpush.bf16.msra.mxu1 %v2433_v22 }
  0x66   :  { %812 = vmatpush.bf16.msrb.mxu2 %v2500_v44  ;;  %825 = vmatpush.bf16.msrb.mxu3 %v2515_v48 }
  0x68   :  { %787 = vmatpush.bf16.msrb.mxu0 %v2479_v36  ;;  %796 = vmatpush.bf16.msra.mxu1 %v2468_v33 }
  0x6a   :  { %813 = vmatpush.bf16.msrb.mxu2 %v2543_v59  ;;  %826 = vmatpush.bf16.msrb.mxu3 %v2545_v60 }
  0x6c   :  { %788 = vmatpush.bf16.msrb.mxu0 %v2534_v56  ;;  %797 = vmatpush.bf16.msra.mxu1 %v2521_v50 }
  0x6e   :  { %814 = vmatpush.bf16.msrb.mxu2 %v2566_v6  ;;  %827 = vmatpush.bf16.msrb.mxu3 %v2575_v9 }
  0x70   :  { %789 = vmatpush.bf16.msrb.mxu0 %v2569_v7  ;;  %798 = vmatpush.bf16.msra.mxu1 %v2560_v4 }
  0x72   :  { %815 = vmatpush.bf16.msrb.mxu2 %v2593_v18  ;;  %828 = vmatpush.bf16.msrb.mxu3 %v2603_v23 }
  0x74   :  { %799 = vmatpush.bf16.msra.mxu1 %v2590_v17 }
  0x78   :  { %800 = vmatpush.bf16.msra.mxu1 %v2610_v27 }
  0x7c   :  { %801 = vmatpush.bf16.msra.mxu1 %v2627_v32 }
  0x80   :  { %802 = vmatpush.bf16.msra.mxu1 %v2639_v35 }
  0x90   :  { %v187_v41 = vpop.f32.mrf.mxu0  ;;  %v202_v42 = vpop.f32.mrf.mxu1 }
  0x91   :  { %v2714_v43 = vadd.f32 %v202_v42, %v2711_v40 }
  0x93   :  { %3064 = vst [vmem:[#allocation9_spill] sm:$0xff] %v2714_v43 }
  0x98   :  { %v2716_v46 = vpop.f32.mrf.mxu2  ;;  %v2718_v38 = vpop.f32.mrf.mxu3 }
  0x99   :  { %v189_v47 = vpop.f32.mrf.mxu0  ;;  %v2720_v49 = vpop.f32.mrf.mxu1 }
  0x9a   :  { %3065 = vst [vmem:[#allocation10_spill] sm:$0xff] %v2720_v49  ;;  %v2723_v51 = vadd.f32 %v189_v47, %v2711_v40 }
  0xa0   :  { %v247_v57 = vpop.f32.mrf.mxu2  ;;  %v276_v58 = vpop.f32.mrf.mxu3 }
  0xa1   :  { %v2728_v62 = vadd.f32 %v247_v57, %v2725_v53  ;;  %v2730_v63 = vadd.f32 %v276_v58, %v60_v54  ;;  %v192_v1 = vpop.f32.mrf.mxu0  ;;  %v2732_v2 = vpop.f32.mrf.mxu1 }
  0xa2   :  { %v2735_v5 = vadd.f32 %v192_v1, %v2711_v40 }
  0xa8   :  { %v250_v11 = vpop.f32.mrf.mxu2  ;;  %v279_v12 = vpop.f32.mrf.mxu3 }
  0xa9   :  { %v2740_v13 = vadd.f32 %v250_v11, %v2725_v53  ;;  %v2742_v16 = vadd.f32 %v279_v12, %v60_v54  ;;  %v194_v20 = vpop.f32.mrf.mxu0  ;;  %v218_v21 = vpop.f32.mrf.mxu1 }
  0xaa   :  { %v2745_v24 = vadd.f32 %v194_v20, %v2711_v40  ;;  %v2748_v28 = vadd.f32 %v218_v21, %v2737_v8 }
  0xb0   :  { %v252_v31 = vpop.f32.mrf.mxu2  ;;  %v281_v30 = vpop.f32.mrf.mxu3 }
  0xb1   :  { %v2751_v34 = vadd.f32 %v252_v31, %v2725_v53  ;;  %v2753_v37 = vadd.f32 %v281_v30, %v60_v54  ;;  %v197_v39 = vpop.f32.mrf.mxu0  ;;  %v221_v42 = vpop.f32.mrf.mxu1 }
  0xb2   :  { %v2756_v47 = vadd.f32 %v197_v39, %v2711_v40  ;;  %v2759_v57 = vadd.f32 %v221_v42, %v2737_v8  ;;  %v188_v39 = vadd.f32 %v187_v41, %v2711_v40 }
  0xb3   :  { %3066 = vst [vmem:[#allocation11_spill] sm:$0xff] %v2751_v34 }
  0xb4   :  { %3067 = vst [vmem:[#allocation12_spill] sm:$0xff] %v2753_v37 }
  0xb5   :  { %3068 = vst [vmem:[#allocation13_spill] sm:$0xff] %v2756_v47 }
  0xb8   :  { %v255_v58 = vpop.f32.mrf.mxu2  ;;  %v284_v1 = vpop.f32.mrf.mxu3 }
  0xb9   :  { %v2762_v11 = vadd.f32 %v255_v58, %v2725_v53  ;;  %v2764_v12 = vadd.f32 %v284_v1, %v60_v54  ;;  %v199_v20 = vpop.f32.mrf.mxu0  ;;  %v223_v21 = vpop.f32.mrf.mxu1 }
  0xba   :  { %v2767_v31 = vadd.f32 %v199_v20, %v2711_v40  ;;  %v2770_v30 = vadd.f32 %v223_v21, %v2737_v8 }
  0xbb   :  { %3069 = vst [vmem:[#allocation14_spill] sm:$0xff] %v2762_v11 }
  0xbc   :  { %3070 = vst [vmem:[#allocation15_spill] sm:$0xff] %v2764_v12 }
  0xbd   :  { %3071 = vst [vmem:[#allocation16_spill] sm:$0xff] %v2767_v31 }
  0xc0   :  { %v257_v49 = vpop.f32.mrf.mxu2  ;;  %v286_v42 = vpop.f32.mrf.mxu3 }
  0xc1   :  { %v2774_v43 = vadd.f32 %v257_v49, %v2725_v53  ;;  %v2776_v47 = vadd.f32 %v286_v42, %v60_v54  ;;  %v226_v58 = vpop.f32.mrf.mxu1  ;;  %v537_v1 = vpop.f32.mrf.mxu0 }
  0xc2   :  { %v2779_v12 = vadd.f32 %v226_v58, %v2737_v8  ;;  %v580_v11 = vadd.f32 %v537_v1, %v188_v39 }
  0xc3   :  { %3072 = vst [vmem:[#allocation17_spill] sm:$0xff] %v2774_v43 }
  0xc4   :  { %3073 = vst [vmem:[#allocation18_spill] sm:$0xff] %v2776_v47  ;;  %v1896_v20 = vmul.f32 -1.442695, %v580_v11 }
  0xc5   :  { %3074 = vst [vmem:[#allocation19_spill] sm:$0xff] %v2779_v12 }
  0xc6   :  { %2019 = vpow2.f32 %v1896_v20 }
  0xc8   :  { %v260_v31 = vpop.f32.mrf.mxu2  ;;  %v289_v21 = vpop.f32.mrf.mxu3 }
  0xc9   :  { %v2782_v37 = vadd.f32 %v260_v31, %v2725_v53  ;;  %v2784_v41 = vadd.f32 %v289_v21, %v60_v54  ;;  %v228_v40 = vpop.f32.mrf.mxu1  ;;  %v539_v49 = vpop.f32.mrf.mxu0 }
  0xca   :  { %v2787_v42 = vadd.f32 %v228_v40, %v2737_v8  ;;  %v275_v49 = vadd.f32 %v2718_v38, %v60_v54  ;;  %v246_v40 = vadd.f32 %v2716_v46, %v2725_v53 }
  0xcb   :  { %3075 = vst [vmem:[#allocation20_spill] sm:$0xff] %v2782_v37 }
  0xcc   :  { %3076 = vst [vmem:[#allocation21_spill] sm:$0xff] %v2784_v41  ;;  %v2020_v47 = vpop.eup %2019 }
  0xcd   :  { %3077 = vst [vmem:[#allocation22_spill] sm:$0xff] %v2787_v42  ;;  %v593_v43 = vadd.f32 1.0, %v2020_v47 }
  0xcf   :  { %2021 = vrcp.f32 %v593_v43  ;;  %v605_v34 = vand.u32 2147483647, %v593_v43  ;;  %vm601_vm2 = vweird.f32 %v593_v43 }
  0xd0   :  { %v262_v58 = vpop.f32.mrf.mxu2  ;;  %v291_v12 = vpop.f32.mrf.mxu3 }
  0xd1   :  { %v2790_v11 = vadd.f32 %v262_v58, %v2725_v53  ;;  %v2792_v39 = vadd.f32 %v291_v12, %v60_v54  ;;  %v231_v1 = vpop.f32.mrf.mxu1  ;;  %v607_v58 = vand.u32 2147483648, %v593_v43  ;;  %vm606_vm4 = vcmp.eq.f32.partialorder %v605_v34, 8.507059e+37 }
  0xd2   :  { %v2795_v31 = vadd.f32 %v231_v1, %v2737_v8 }
  0xd3   :  { %3078 = vst [vmem:[#allocation23_spill] sm:$0xff] %v2790_v11  ;;  %v608_v38 = vor.u32 1.1754944e-38, %v607_v58 }
  0xd4   :  { %3079 = vst [vmem:[#allocation24_spill] sm:$0xff] %v2792_v39 }
  0xd5   :  { %3080 = vst [vmem:[#allocation25_spill] sm:$0xff] %v2795_v31  ;;  %v2022_v20 = vpop.eup %2021 }
  0xd6   :  { %v597_v21 = vmul.f32 %v2022_v20, %v593_v43  ;;  %vm602_vm1 = vweird.f32 %v2022_v20 }
  0xd7   :  { %vm603_vm3 = vmor %vm601_vm2, %vm602_vm1 }
  0xd8   :  { %v598_v47 = vsub.f32 1.0, %v597_v21  ;;  %v563_v41 = vpop.f32.mrf.mxu2  ;;  %v576_v37 = vpop.f32.mrf.mxu3 }
  0xd9   :  { %v583_v42 = vadd.f32 %v576_v37, %v275_v49  ;;  %v233_v11 = vpop.f32.mrf.mxu1  ;;  %v582_v12 = vadd.f32 %v563_v41, %v246_v40  ;;  %v217_v37 = vadd.f32 %v2732_v2, %v2737_v8 }
  0xda   :  { %v599_v39 = vmul.f32 %v2022_v20, %v598_v47  ;;  %v2801_v1 = vadd.f32 %v233_v11, %v2737_v8 }
  0xdb   :  { %2023 = vtanh.f32 %v583_v42  ;;  %v1898_v54 = vmul.f32 -1.442695, %v582_v12 }
  0xdc   :  { %3081 = vst [vmem:[#allocation26_spill] sm:$0xff] %v2801_v1  ;;  %v600_v31 = vadd.f32 %v2022_v20, %v599_v39 }
  0xdd   :  { %2025 = vpow2.f32 %v1898_v54 }
  0xde   :  { %v604_v46 = vsel %vm603_vm3, %v2022_v20, %v600_v31 }
  0xdf   :  { %v609_v53 = vsel %vm606_vm4, %v608_v38, %v604_v46 }
  0xe0   :  { %v565_v21 = vpop.f32.mrf.mxu2  ;;  %v578_v49 = vpop.f32.mrf.mxu3 }
  0xe1   :  { %v2024_v41 = vpop.eup %2023  ;;  %v550_v40 = vpop.f32.mrf.mxu1 }
  0xe2   :  { %v643_v47 = vmul.f32 %v2024_v41, %v609_v53  ;;  %v581_v11 = vadd.f32 %v550_v40, %v217_v37 }
  0xe3   :  { %v2026_v42 = vpop.eup %2025 }
  0xe4   :  { %v1897_v1 = vmul.f32 -1.442695, %v581_v11  ;;  %v595_v39 = vadd.f32 1.0, %v2026_v42 }
  0xe6   :  { %2027 = vpow2.f32 %v1897_v1  ;;  %vm631_vm10 = vweird.f32 %v595_v39 }
  0xe7   :  { %2029 = vrcp.f32 %v595_v39 }
  0xe9   :  { %v552_v43 = vpop.f32.mrf.mxu1 }
  0xea   :  { %v637_v43 = vand.u32 2147483648, %v595_v39 }
  0xec   :  { %v2028_v58 = vpop.eup %2027 }
  0xed   :  { %v594_v12 = vadd.f32 1.0, %v2028_v58  ;;  %v2030_v34 = vpop.eup %2029  ;;  %v635_v58 = vand.u32 2147483647, %v595_v39 }
  0xee   :  { %v627_v2 = vmul.f32 %v2030_v34, %v595_v39  ;;  %vm632_vm9 = vweird.f32 %v2030_v34 }
  0xef   :  { %2031 = vrcp.f32 %v594_v12  ;;  %v622_v38 = vand.u32 2147483648, %v594_v12  ;;  %v620_v54 = vand.u32 2147483647, %v594_v12  ;;  %vm616_vm6 = vweird.f32 %v594_v12  ;;  %vm633_vm11 = vmor %vm631_vm10, %vm632_vm9 }
  0xf0   :  { %v628_v53 = vsub.f32 1.0, %v627_v2  ;;  %v638_v2 = vor.u32 1.1754944e-38, %v637_v43  ;;  %vm636_vm12 = vcmp.eq.f32.partialorder %v635_v58, 8.507059e+37 }
  0xf1   :  { %v623_v1 = vor.u32 1.1754944e-38, %v622_v38  ;;  %vm621_vm8 = vcmp.eq.f32.partialorder %v620_v54, 8.507059e+37 }
  0xf2   :  { %v629_v41 = vmul.f32 %v2030_v34, %v628_v53 }
  0xf4   :  { %v630_v42 = vadd.f32 %v2030_v34, %v629_v41 }
  0xf5   :  { %v2032_v31 = vpop.eup %2031 }
  0xf6   :  { %v612_v20 = vmul.f32 %v2032_v31, %v594_v12  ;;  %vm617_vm5 = vweird.f32 %v2032_v31 }
  0xf7   :  { %vm618_vm7 = vmor %vm616_vm6, %vm617_vm5 }
  0xf8   :  { %v613_v8 = vsub.f32 1.0, %v612_v20  ;;  %v634_v20 = vsel %vm633_vm11, %v2030_v34, %v630_v42 }
  0xfa   :  { %v614_v46 = vmul.f32 %v2032_v31, %v613_v8  ;;  %v639_v8 = vsel %vm636_vm12, %v638_v2, %v634_v20 }
  0xfc   :  { %v615_v37 = vadd.f32 %v2032_v31, %v614_v46 }
  0xfe   :  { %v619_v21 = vsel %vm618_vm7, %v2032_v31, %v615_v37 }
  0xff   :  { %v624_v49 = vsel %vm621_vm8, %v623_v1, %v619_v21 }
 0x100   :  { %v642_v40 = vmul.f32 0.0, %v624_v49 }
 0x102   :  { %v2805_v11 = vadd.f32 %v643_v47, %v642_v40 }
 0x104   :  { %2033 = vtanh.f32 %v2805_v11 }
 0x10a   :  { %v2034_v12 = vpop.eup %2033 }
 0x10b   :  { %v646_v31 = vmul.f32 %v2034_v12, %v639_v8 }
 0x10d   :  { %v654_v38 = vpack.c.bf16 %v646_v31, %v646_v31 }
 0x10f   :  { %663 = vmatmul.bf16.vlgmr.msra.gmra.mxu0 %v654_v38  ;;  %676 = vmatmul.bf16.vlgmr.msrb.gmra.mxu1 %v654_v38 }
 0x110   :  { %689 = vmatmul.bf16.vlgmr.msra.gmra.mxu2 %v654_v38  ;;  %702 = vmatmul.bf16.vlgmr.msra.gmra.mxu3 %v654_v38 }
 0x111   :  { %909 = vmatpush.bf16.msra.mxu0 %v2314_v45  ;;  %922 = vmatpush.bf16.msrb.mxu1 %v2433_v22 }
 0x112   :  { %935 = vmatpush.bf16.msra.mxu2 %v2334_v52  ;;  %948 = vmatpush.bf16.msra.mxu3 %v2361_v61 }
 0x115   :  { %910 = vmatpush.bf16.msra.mxu0 %v2340_v55  ;;  %923 = vmatpush.bf16.msrb.mxu1 %v2468_v33 }
 0x116   :  { %936 = vmatpush.bf16.msra.mxu2 %v2374_v0  ;;  %949 = vmatpush.bf16.msra.mxu3 %v2401_v10 }
 0x119   :  { %911 = vmatpush.bf16.msra.mxu0 %v2381_v3  ;;  %924 = vmatpush.bf16.msrb.mxu1 %v2521_v50 }
 0x11a   :  { %937 = vmatpush.bf16.msra.mxu2 %v2413_v14  ;;  %950 = vmatpush.bf16.msra.mxu3 %v2416_v15 }
 0x11d   :  { %912 = vmatpush.bf16.msra.mxu0 %v2425_v19  ;;  %925 = vmatpush.bf16.msrb.mxu1 %v2560_v4 }
 0x11e   :  { %938 = vmatpush.bf16.msra.mxu2 %v2443_v25  ;;  %951 = vmatpush.bf16.msra.mxu3 %v2445_v26 }
 0x121   :  { %913 = vmatpush.bf16.msra.mxu0 %v2454_v29  ;;  %926 = vmatpush.bf16.msrb.mxu1 %v2590_v17 }
 0x122   :  { %939 = vmatpush.bf16.msra.mxu2 %v2500_v44  ;;  %952 = vmatpush.bf16.msra.mxu3 %v2515_v48 }
 0x125   :  { %914 = vmatpush.bf16.msra.mxu0 %v2479_v36  ;;  %927 = vmatpush.bf16.msrb.mxu1 %v2610_v27 }
 0x126   :  { %940 = vmatpush.bf16.msra.mxu2 %v2543_v59  ;;  %953 = vmatpush.bf16.msra.mxu3 %v2545_v60 }
 0x129   :  { %915 = vmatpush.bf16.msra.mxu0 %v2534_v56  ;;  %928 = vmatpush.bf16.msrb.mxu1 %v2627_v32 }
 0x12a   :  { %941 = vmatpush.bf16.msra.mxu2 %v2566_v6  ;;  %954 = vmatpush.bf16.msra.mxu3 %v2575_v9 }
 0x12d   :  { %916 = vmatpush.bf16.msra.mxu0 %v2569_v7  ;;  %929 = vmatpush.bf16.msrb.mxu1 %v2639_v35 }
 0x12e   :  { %942 = vmatpush.bf16.msra.mxu2 %v2593_v18  ;;  %955 = vmatpush.bf16.msra.mxu3 %v2603_v23 }
 0x18c   :  { %v664_v47 = vpop.f32.mrf.mxu0  ;;  %v677_v39 = vpop.f32.mrf.mxu1 }
 0x18d   :  { %v707_v34 = vadd.f32 %v664_v47, %v2723_v51  ;;  %v708_v46 = vadd.f32 %v677_v39, %v2748_v28 }
 0x18f   :  { %v1899_v54 = vmul.f32 -1.442695, %v707_v34  ;;  %v1900_v53 = vmul.f32 -1.442695, %v708_v46 }
 0x191   :  { %2035 = vpow2.f32 %v1899_v54 }
 0x192   :  { %2037 = vpow2.f32 %v1900_v53 }
 0x193   :  { %v690_v37 = vpop.f32.mrf.mxu2  ;;  %v703_v1 = vpop.f32.mrf.mxu3 }
 0x194   :  { %v709_v21 = vadd.f32 %v690_v37, %v2728_v62  ;;  %v666_v49 = vpop.f32.mrf.mxu0  ;;  %v679_v41 = vpop.f32.mrf.mxu1  ;;  %v710_v31 = vadd.f32 %v703_v1, %v2730_v63 }
 0x196   :  { %v1901_v40 = vmul.f32 -1.442695, %v709_v21 }
 0x197   :  { %v2036_v42 = vpop.eup %2035 }
 0x198   :  { %v2038_v43 = vpop.eup %2037  ;;  %v720_v58 = vadd.f32 1.0, %v2036_v42  ;;  %2039 = vpow2.f32 %v1901_v40 }
 0x199   :  { %v721_v20 = vadd.f32 1.0, %v2038_v43 }
 0x19a   :  { %2041 = vrcp.f32 %v720_v58  ;;  %v734_v46 = vand.u32 2147483648, %v720_v58  ;;  %v732_v37 = vand.u32 2147483647, %v720_v58  ;;  %vm728_vm15 = vweird.f32 %v720_v58 }
 0x19b   :  { %2043 = vrcp.f32 %v721_v20  ;;  %v692_v51 = vpop.f32.mrf.mxu2  ;;  %v705_v28 = vpop.f32.mrf.mxu3  ;;  %v749_v54 = vand.u32 2147483648, %v721_v20  ;;  %v747_v49 = vand.u32 2147483647, %v721_v20  ;;  %vm743_vm0 = vweird.f32 %v721_v20 }
 0x19c   :  { %v735_v1 = vor.u32 1.1754944e-38, %v734_v46  ;;  %vm733_vm3 = vcmp.eq.f32.partialorder %v732_v37, 8.507059e+37 }
 0x19d   :  { %v750_v43 = vor.u32 1.1754944e-38, %v749_v54  ;;  %vm748_vm4 = vcmp.eq.f32.partialorder %v747_v49, 8.507059e+37 }
 0x19e   :  { %v2040_v2 = vpop.eup %2039 }
 0x19f   :  { %v722_v12 = vadd.f32 1.0, %v2040_v2 }
 0x1a0   :  { %v2042_v8 = vpop.eup %2041 }
 0x1a1   :  { %v2044_v38 = vpop.eup %2043  ;;  %v724_v47 = vmul.f32 %v2042_v8, %v720_v58  ;;  %2045 = vrcp.f32 %v722_v12  ;;  %vm729_vm13 = vweird.f32 %v2042_v8  ;;  %v764_v46 = vand.u32 2147483648, %v722_v12 }
 0x1a2   :  { %v739_v62 = vmul.f32 %v2044_v38, %v721_v20  ;;  %2047 = vtanh.f32 %v710_v31  ;;  %vm744_vm14 = vweird.f32 %v2044_v38  ;;  %vm730_vm1 = vmor %vm728_vm15, %vm729_vm13  ;;  %vm758_vm6 = vweird.f32 %v722_v12 }
 0x1a3   :  { %v725_v39 = vsub.f32 1.0, %v724_v47  ;;  %vm745_vm2 = vmor %vm743_vm0, %vm744_vm14  ;;  %v765_v37 = vor.u32 1.1754944e-38, %v764_v46 }
 0x1a4   :  { %v740_v34 = vsub.f32 1.0, %v739_v62 }
 0x1a5   :  { %v726_v53 = vmul.f32 %v2042_v8, %v725_v39 }
 0x1a6   :  { %v741_v21 = vmul.f32 %v2044_v38, %v740_v34 }
 0x1a7   :  { %v2046_v41 = vpop.eup %2045  ;;  %v727_v40 = vadd.f32 %v2042_v8, %v726_v53 }
 0x1a8   :  { %v754_v63 = vmul.f32 %v2046_v41, %v722_v12  ;;  %v742_v42 = vadd.f32 %v2044_v38, %v741_v21  ;;  %v2048_v28 = vpop.eup %2047  ;;  %vm759_vm5 = vweird.f32 %v2046_v41 }
 0x1a9   :  { %v731_v51 = vsel %vm730_vm1, %v2042_v8, %v727_v40  ;;  %v762_v8 = vand.u32 2147483647, %v722_v12  ;;  %vm760_vm7 = vmor %vm758_vm6, %vm759_vm5 }
 0x1aa   :  { %v755_v2 = vsub.f32 1.0, %v754_v63  ;;  %v736_v31 = vsel %vm733_vm3, %v735_v1, %v731_v51  ;;  %v746_v47 = vsel %vm745_vm2, %v2044_v38, %v742_v42 }
 0x1ab   :  { %v751_v62 = vsel %vm748_vm4, %v750_v43, %v746_v47  ;;  %v770_v39 = vmul.f32 %v2048_v28, %v736_v31  ;;  %vm763_vm8 = vcmp.eq.f32.partialorder %v762_v8, 8.507059e+37 }
 0x1ac   :  { %v769_v34 = vmul.f32 %v751_v62, %v2805_v11  ;;  %v756_v53 = vmul.f32 %v2046_v41, %v755_v2 }
 0x1ae   :  { %v2845_v58 = vadd.f32 %v770_v39, %v769_v34  ;;  %v757_v20 = vadd.f32 %v2046_v41, %v756_v53 }
 0x1b0   :  { %2049 = vtanh.f32 %v2845_v58  ;;  %v761_v54 = vsel %vm760_vm7, %v2046_v41, %v757_v20 }
 0x1b1   :  { %v766_v21 = vsel %vm763_vm8, %v765_v37, %v761_v54 }
 0x1b6   :  { %v2050_v38 = vpop.eup %2049 }
 0x1b7   :  { %v773_v49 = vmul.f32 %v2050_v38, %v766_v21 }
 0x1b9   :  { %v781_v40 = vpack.c.bf16 %v773_v49, %v773_v49 }
 0x1bb   :  { %790 = vmatmul.bf16.vlgmr.msrb.gmra.mxu0 %v781_v40  ;;  %803 = vmatmul.bf16.vlgmr.msra.gmra.mxu1 %v781_v40 }
 0x1bc   :  { %816 = vmatmul.bf16.vlgmr.msrb.gmra.mxu2 %v781_v40  ;;  %829 = vmatmul.bf16.vlgmr.msrb.gmra.mxu3 %v781_v40 }
 0x1bd   :  { %1036 = vmatpush.bf16.msrb.mxu0 %v2314_v45  ;;  %1049 = vmatpush.bf16.msra.mxu1 %v2433_v22 }
 0x1be   :  { %1062 = vmatpush.bf16.msrb.mxu2 %v2334_v52  ;;  %1075 = vmatpush.bf16.msrb.mxu3 %v2361_v61 }
 0x1c1   :  { %1037 = vmatpush.bf16.msrb.mxu0 %v2340_v55  ;;  %1050 = vmatpush.bf16.msra.mxu1 %v2468_v33 }
 0x1c2   :  { %1063 = vmatpush.bf16.msrb.mxu2 %v2374_v0  ;;  %1076 = vmatpush.bf16.msrb.mxu3 %v2401_v10 }
 0x1c5   :  { %1038 = vmatpush.bf16.msrb.mxu0 %v2381_v3  ;;  %1051 = vmatpush.bf16.msra.mxu1 %v2521_v50 }
 0x1c6   :  { %1064 = vmatpush.bf16.msrb.mxu2 %v2413_v14  ;;  %1077 = vmatpush.bf16.msrb.mxu3 %v2416_v15 }
 0x1c9   :  { %1039 = vmatpush.bf16.msrb.mxu0 %v2425_v19  ;;  %1052 = vmatpush.bf16.msra.mxu1 %v2560_v4 }
 0x1ca   :  { %1065 = vmatpush.bf16.msrb.mxu2 %v2443_v25  ;;  %1078 = vmatpush.bf16.msrb.mxu3 %v2445_v26 }
 0x1cd   :  { %1040 = vmatpush.bf16.msrb.mxu0 %v2454_v29  ;;  %1053 = vmatpush.bf16.msra.mxu1 %v2590_v17 }
 0x1ce   :  { %1066 = vmatpush.bf16.msrb.mxu2 %v2500_v44  ;;  %1079 = vmatpush.bf16.msrb.mxu3 %v2515_v48 }
 0x1d1   :  { %1041 = vmatpush.bf16.msrb.mxu0 %v2479_v36  ;;  %1054 = vmatpush.bf16.msra.mxu1 %v2610_v27 }
 0x1d2   :  { %1067 = vmatpush.bf16.msrb.mxu2 %v2543_v59  ;;  %1080 = vmatpush.bf16.msrb.mxu3 %v2545_v60 }
 0x1d5   :  { %1042 = vmatpush.bf16.msrb.mxu0 %v2534_v56  ;;  %1055 = vmatpush.bf16.msra.mxu1 %v2627_v32 }
 0x1d6   :  { %1068 = vmatpush.bf16.msrb.mxu2 %v2566_v6  ;;  %1081 = vmatpush.bf16.msrb.mxu3 %v2575_v9 }
 0x1d9   :  { %1043 = vmatpush.bf16.msrb.mxu0 %v2569_v7  ;;  %1056 = vmatpush.bf16.msra.mxu1 %v2639_v35 }
 0x1da   :  { %1069 = vmatpush.bf16.msrb.mxu2 %v2593_v18  ;;  %1082 = vmatpush.bf16.msrb.mxu3 %v2603_v23 }
 0x238   :  { %v791_v11 = vpop.f32.mrf.mxu0  ;;  %v804_v12 = vpop.f32.mrf.mxu1 }
 0x239   :  { %v834_v41 = vadd.f32 %v791_v11, %v2735_v5  ;;  %v835_v63 = vadd.f32 %v804_v12, %v2759_v57 }
 0x23b   :  { %v1902_v1 = vmul.f32 -1.442695, %v834_v41  ;;  %v1903_v42 = vmul.f32 -1.442695, %v835_v63 }
 0x23d   :  { %2051 = vpow2.f32 %v1902_v1 }
 0x23e   :  { %2053 = vpow2.f32 %v1903_v42 }
 0x23f   :  { %v817_v43 = vpop.f32.mrf.mxu2  ;;  %v830_v51 = vpop.f32.mrf.mxu3 }
 0x240   :  { %v836_v28 = vadd.f32 %v817_v43, %v2740_v13  ;;  %v793_v2 = vpop.f32.mrf.mxu0  ;;  %v806_v31 = vpop.f32.mrf.mxu1  ;;  %v837_v54 = vadd.f32 %v830_v51, %v2742_v16 }
 0x242   :  { %v1904_v47 = vmul.f32 -1.442695, %v836_v28 }
 0x243   :  { %v2052_v62 = vpop.eup %2051 }
 0x244   :  { %v2054_v39 = vpop.eup %2053  ;;  %v847_v34 = vadd.f32 1.0, %v2052_v62  ;;  %2055 = vpow2.f32 %v1904_v47 }
 0x245   :  { %v848_v53 = vadd.f32 1.0, %v2054_v39 }
 0x246   :  { %2057 = vrcp.f32 %v847_v34  ;;  %v861_v40 = vand.u32 2147483648, %v847_v34  ;;  %v859_v41 = vand.u32 2147483647, %v847_v34  ;;  %vm855_vm11 = vweird.f32 %v847_v34 }
 0x247   :  { %2059 = vrcp.f32 %v848_v53  ;;  %v819_v5 = vpop.f32.mrf.mxu2  ;;  %v832_v57 = vpop.f32.mrf.mxu3  ;;  %v876_v11 = vand.u32 2147483648, %v848_v53  ;;  %v874_v1 = vand.u32 2147483647, %v848_v53  ;;  %vm870_vm12 = vweird.f32 %v848_v53 }
 0x248   :  { %v862_v51 = vor.u32 1.1754944e-38, %v861_v40  ;;  %vm860_vm15 = vcmp.eq.f32.partialorder %v859_v41, 8.507059e+37 }
 0x249   :  { %v877_v2 = vor.u32 1.1754944e-38, %v876_v11  ;;  %vm875_vm0 = vcmp.eq.f32.partialorder %v874_v1, 8.507059e+37 }
 0x24a   :  { %v2056_v20 = vpop.eup %2055 }
 0x24b   :  { %v849_v46 = vadd.f32 1.0, %v2056_v20 }
 0x24c   :  { %v2058_v8 = vpop.eup %2057 }
 0x24d   :  { %v2060_v37 = vpop.eup %2059  ;;  %v851_v38 = vmul.f32 %v2058_v8, %v847_v34  ;;  %2061 = vrcp.f32 %v849_v46  ;;  %vm856_vm9 = vweird.f32 %v2058_v8  ;;  %vm885_vm2 = vweird.f32 %v849_v46 }
 0x24e   :  { %v866_v13 = vmul.f32 %v2060_v37, %v848_v53  ;;  %2063 = vtanh.f32 %v837_v54  ;;  %vm871_vm10 = vweird.f32 %v2060_v37  ;;  %vm857_vm13 = vmor %vm855_vm11, %vm856_vm9 }
 0x24f   :  { %v852_v21 = vsub.f32 1.0, %v851_v38  ;;  %vm872_vm14 = vmor %vm870_vm12, %vm871_vm10 }
 0x250   :  { %v867_v49 = vsub.f32 1.0, %v866_v13  ;;  %v891_v13 = vand.u32 2147483648, %v849_v46 }
 0x251   :  { %v853_v12 = vmul.f32 %v2058_v8, %v852_v21 }
 0x252   :  { %v868_v63 = vmul.f32 %v2060_v37, %v867_v49  ;;  %v892_v49 = vor.u32 1.1754944e-38, %v891_v13 }
 0x253   :  { %v2062_v42 = vpop.eup %2061  ;;  %v854_v43 = vadd.f32 %v2058_v8, %v853_v12 }
 0x254   :  { %v881_v16 = vmul.f32 %v2062_v42, %v849_v46  ;;  %v869_v28 = vadd.f32 %v2060_v37, %v868_v63  ;;  %v2064_v47 = vpop.eup %2063  ;;  %vm886_vm1 = vweird.f32 %v2062_v42 }
 0x255   :  { %v858_v31 = vsel %vm857_vm13, %v2058_v8, %v854_v43  ;;  %v889_v8 = vand.u32 2147483647, %v849_v46  ;;  %vm887_vm3 = vmor %vm885_vm2, %vm886_vm1 }
 0x256   :  { %v882_v62 = vsub.f32 1.0, %v881_v16  ;;  %v863_v39 = vsel %vm860_vm15, %v862_v51, %v858_v31  ;;  %v873_v5 = vsel %vm872_vm14, %v2060_v37, %v869_v28  ;;  %v3082_v51 = vld [vmem:[#allocation11_spill] sm:$0xff] }
 0x257   :  { %v878_v57 = vsel %vm875_vm0, %v877_v2, %v873_v5  ;;  %v897_v20 = vmul.f32 %v2064_v47, %v863_v39  ;;  %vm890_vm4 = vcmp.eq.f32.partialorder %v889_v8, 8.507059e+37 }
 0x258   :  { %v896_v54 = vmul.f32 %v878_v57, %v2845_v58  ;;  %v883_v38 = vmul.f32 %v2062_v42, %v882_v62 }
 0x25a   :  { %v2885_v34 = vadd.f32 %v897_v20, %v896_v54  ;;  %v884_v53 = vadd.f32 %v2062_v42, %v883_v38 }
 0x25c   :  { %2065 = vtanh.f32 %v2885_v34  ;;  %v888_v21 = vsel %vm887_vm3, %v2062_v42, %v884_v53  ;;  %v3083_v53 = vld [vmem:[#allocation12_spill] sm:$0xff] }
 0x25d   :  { %v893_v40 = vsel %vm890_vm4, %v892_v49, %v888_v21 }
 0x262   :  { %v2066_v37 = vpop.eup %2065 }
 0x263   :  { %v900_v11 = vmul.f32 %v2066_v37, %v893_v40 }
 0x265   :  { %v908_v12 = vpack.c.bf16 %v900_v11, %v900_v11 }
 0x267   :  { %917 = vmatmul.bf16.vlgmr.msra.gmra.mxu0 %v908_v12  ;;  %930 = vmatmul.bf16.vlgmr.msrb.gmra.mxu1 %v908_v12 }
 0x268   :  { %943 = vmatmul.bf16.vlgmr.msra.gmra.mxu2 %v908_v12  ;;  %956 = vmatmul.bf16.vlgmr.msra.gmra.mxu3 %v908_v12 }
 0x269   :  { %1163 = vmatpush.bf16.msra.mxu0 %v2314_v45  ;;  %1176 = vmatpush.bf16.msrb.mxu1 %v2433_v22 }
 0x26a   :  { %1189 = vmatpush.bf16.msra.mxu2 %v2334_v52  ;;  %1202 = vmatpush.bf16.msra.mxu3 %v2361_v61 }
 0x26d   :  { %1164 = vmatpush.bf16.msra.mxu0 %v2340_v55  ;;  %1177 = vmatpush.bf16.msrb.mxu1 %v2468_v33 }
 0x26e   :  { %1190 = vmatpush.bf16.msra.mxu2 %v2374_v0  ;;  %1203 = vmatpush.bf16.msra.mxu3 %v2401_v10 }
 0x271   :  { %1165 = vmatpush.bf16.msra.mxu0 %v2381_v3  ;;  %1178 = vmatpush.bf16.msrb.mxu1 %v2521_v50 }
 0x272   :  { %1191 = vmatpush.bf16.msra.mxu2 %v2413_v14  ;;  %1204 = vmatpush.bf16.msra.mxu3 %v2416_v15 }
 0x275   :  { %1166 = vmatpush.bf16.msra.mxu0 %v2425_v19  ;;  %1179 = vmatpush.bf16.msrb.mxu1 %v2560_v4 }
 0x276   :  { %1192 = vmatpush.bf16.msra.mxu2 %v2443_v25  ;;  %1205 = vmatpush.bf16.msra.mxu3 %v2445_v26 }
 0x279   :  { %1167 = vmatpush.bf16.msra.mxu0 %v2454_v29  ;;  %1180 = vmatpush.bf16.msrb.mxu1 %v2590_v17 }
 0x27a   :  { %1193 = vmatpush.bf16.msra.mxu2 %v2500_v44  ;;  %1206 = vmatpush.bf16.msra.mxu3 %v2515_v48 }
 0x27d   :  { %1168 = vmatpush.bf16.msra.mxu0 %v2479_v36  ;;  %1181 = vmatpush.bf16.msrb.mxu1 %v2610_v27 }
 0x27e   :  { %1194 = vmatpush.bf16.msra.mxu2 %v2543_v59  ;;  %1207 = vmatpush.bf16.msra.mxu3 %v2545_v60 }
 0x281   :  { %1169 = vmatpush.bf16.msra.mxu0 %v2534_v56  ;;  %1182 = vmatpush.bf16.msrb.mxu1 %v2627_v32 }
 0x282   :  { %1195 = vmatpush.bf16.msra.mxu2 %v2566_v6  ;;  %1208 = vmatpush.bf16.msra.mxu3 %v2575_v9 }
 0x285   :  { %1170 = vmatpush.bf16.msra.mxu0 %v2569_v7  ;;  %1183 = vmatpush.bf16.msrb.mxu1 %v2639_v35 }
 0x286   :  { %1196 = vmatpush.bf16.msra.mxu2 %v2593_v18  ;;  %1209 = vmatpush.bf16.msra.mxu3 %v2603_v23 }
 0x2e4   :  { %v918_v58 = vpop.f32.mrf.mxu0  ;;  %v931_v46 = vpop.f32.mrf.mxu1 }
 0x2e5   :  { %v961_v41 = vadd.f32 %v918_v58, %v2745_v24  ;;  %v962_v63 = vadd.f32 %v931_v46, %v2770_v30 }
 0x2e7   :  { %v1905_v1 = vmul.f32 -1.442695, %v961_v41  ;;  %v1906_v42 = vmul.f32 -1.442695, %v962_v63 }
 0x2e9   :  { %2067 = vpow2.f32 %v1905_v1 }
 0x2ea   :  { %2069 = vpow2.f32 %v1906_v42 }
 0x2eb   :  { %v944_v43 = vpop.f32.mrf.mxu2  ;;  %v957_v16 = vpop.f32.mrf.mxu3 }
 0x2ec   :  { %v963_v28 = vadd.f32 %v944_v43, %v3082_v51  ;;  %v920_v2 = vpop.f32.mrf.mxu0  ;;  %v933_v31 = vpop.f32.mrf.mxu1  ;;  %v964_v13 = vadd.f32 %v957_v16, %v3083_v53 }
 0x2ee   :  { %v1907_v47 = vmul.f32 -1.442695, %v963_v28 }
 0x2ef   :  { %v2068_v62 = vpop.eup %2067 }
 0x2f0   :  { %v2070_v39 = vpop.eup %2069  ;;  %v974_v5 = vadd.f32 1.0, %v2068_v62  ;;  %2071 = vpow2.f32 %v1907_v47 }
 0x2f1   :  { %v975_v57 = vadd.f32 1.0, %v2070_v39 }
 0x2f2   :  { %2073 = vrcp.f32 %v974_v5  ;;  %v988_v11 = vand.u32 2147483648, %v974_v5  ;;  %v986_v46 = vand.u32 2147483647, %v974_v5  ;;  %vm982_vm7 = vweird.f32 %v974_v5 }
 0x2f3   :  { %2075 = vrcp.f32 %v975_v57  ;;  %v946_v24 = vpop.f32.mrf.mxu2  ;;  %v959_v30 = vpop.f32.mrf.mxu3  ;;  %v1003_v12 = vand.u32 2147483648, %v975_v57  ;;  %v1001_v63 = vand.u32 2147483647, %v975_v57  ;;  %vm997_vm8 = vweird.f32 %v975_v57 }
 0x2f4   :  { %v989_v16 = vor.u32 1.1754944e-38, %v988_v11  ;;  %vm987_vm11 = vcmp.eq.f32.partialorder %v986_v46, 8.507059e+37  ;;  %v3085_v46 = vld [vmem:[#allocation19_spill] sm:$0xff] }
 0x2f5   :  { %v1004_v28 = vor.u32 1.1754944e-38, %v1003_v12  ;;  %vm1002_vm12 = vcmp.eq.f32.partialorder %v1001_v63, 8.507059e+37  ;;  %v3084_v12 = vld [vmem:[#allocation13_spill] sm:$0xff] }
 0x2f6   :  { %v2072_v20 = vpop.eup %2071 }
 0x2f7   :  { %v976_v54 = vadd.f32 1.0, %v2072_v20 }
 0x2f8   :  { %v2074_v38 = vpop.eup %2073 }
 0x2f9   :  { %v2076_v8 = vpop.eup %2075  ;;  %v978_v21 = vmul.f32 %v2074_v38, %v974_v5  ;;  %2077 = vrcp.f32 %v976_v54  ;;  %vm983_vm5 = vweird.f32 %v2074_v38  ;;  %vm1012_vm14 = vweird.f32 %v976_v54 }
 0x2fa   :  { %v993_v49 = vmul.f32 %v2076_v8, %v975_v57  ;;  %2079 = vtanh.f32 %v964_v13  ;;  %vm998_vm6 = vweird.f32 %v2076_v8  ;;  %vm984_vm9 = vmor %vm982_vm7, %vm983_vm5  ;;  %v1018_v13 = vand.u32 2147483648, %v976_v54 }
 0x2fb   :  { %v979_v37 = vsub.f32 1.0, %v978_v21  ;;  %vm999_vm10 = vmor %vm997_vm8, %vm998_vm6 }
 0x2fc   :  { %v994_v40 = vsub.f32 1.0, %v993_v49  ;;  %v1019_v49 = vor.u32 1.1754944e-38, %v1018_v13 }
 0x2fd   :  { %v980_v58 = vmul.f32 %v2074_v38, %v979_v37 }
 0x2fe   :  { %v995_v41 = vmul.f32 %v2076_v8, %v994_v40 }
 0x2ff   :  { %v2078_v1 = vpop.eup %2077  ;;  %v981_v42 = vadd.f32 %v2074_v38, %v980_v58 }
 0x300   :  { %v1008_v43 = vmul.f32 %v2078_v1, %v976_v54  ;;  %v996_v51 = vadd.f32 %v2076_v8, %v995_v41  ;;  %v2080_v31 = vpop.eup %2079  ;;  %vm1013_vm13 = vweird.f32 %v2078_v1 }
 0x301   :  { %v985_v2 = vsel %vm984_vm9, %v2074_v38, %v981_v42  ;;  %v1016_v38 = vand.u32 2147483647, %v976_v54  ;;  %vm1014_vm15 = vmor %vm1012_vm14, %vm1013_vm13 }
 0x302   :  { %v1009_v47 = vsub.f32 1.0, %v1008_v43  ;;  %v990_v62 = vsel %vm987_vm11, %v989_v16, %v985_v2  ;;  %v1000_v39 = vsel %vm999_vm10, %v2076_v8, %v996_v51  ;;  %v3086_v16 = vld [vmem:[#allocation14_spill] sm:$0xff] }
 0x303   :  { %v1005_v24 = vsel %vm1002_vm12, %v1004_v28, %v1000_v39  ;;  %v1024_v30 = vmul.f32 %v2080_v31, %v990_v62  ;;  %vm1017_vm0 = vcmp.eq.f32.partialorder %v1016_v38, 8.507059e+37  ;;  %v3087_v38 = vld [vmem:[#allocation15_spill] sm:$0xff] }
 0x304   :  { %v1023_v20 = vmul.f32 %v1005_v24, %v2885_v34  ;;  %v1010_v53 = vmul.f32 %v2078_v1, %v1009_v47 }
 0x306   :  { %v2925_v5 = vadd.f32 %v1024_v30, %v1023_v20  ;;  %v1011_v57 = vadd.f32 %v2078_v1, %v1010_v53 }
 0x308   :  { %2081 = vtanh.f32 %v2925_v5  ;;  %v1015_v21 = vsel %vm1014_vm15, %v2078_v1, %v1011_v57 }
 0x309   :  { %v1020_v37 = vsel %vm1017_vm0, %v1019_v49, %v1015_v21 }
 0x30e   :  { %v2082_v8 = vpop.eup %2081 }
 0x30f   :  { %v1027_v40 = vmul.f32 %v2082_v8, %v1020_v37 }
 0x311   :  { %v1035_v11 = vpack.c.bf16 %v1027_v40, %v1027_v40 }
 0x313   :  { %1044 = vmatmul.bf16.vlgmr.msrb.gmra.mxu0 %v1035_v11  ;;  %1057 = vmatmul.bf16.vlgmr.msra.gmra.mxu1 %v1035_v11 }
 0x314   :  { %1070 = vmatmul.bf16.vlgmr.msrb.gmra.mxu2 %v1035_v11  ;;  %1083 = vmatmul.bf16.vlgmr.msrb.gmra.mxu3 %v1035_v11 }
 0x315   :  { %1290 = vmatpush.bf16.msrb.mxu0 %v2314_v45  ;;  %1303 = vmatpush.bf16.msra.mxu1 %v2433_v22 }
 0x316   :  { %1316 = vmatpush.bf16.msrb.mxu2 %v2334_v52  ;;  %1329 = vmatpush.bf16.msrb.mxu3 %v2361_v61 }
 0x319   :  { %1291 = vmatpush.bf16.msrb.mxu0 %v2340_v55  ;;  %1304 = vmatpush.bf16.msra.mxu1 %v2468_v33 }
 0x31a   :  { %1317 = vmatpush.bf16.msrb.mxu2 %v2374_v0  ;;  %1330 = vmatpush.bf16.msrb.mxu3 %v2401_v10 }
 0x31d   :  { %1292 = vmatpush.bf16.msrb.mxu0 %v2381_v3  ;;  %1305 = vmatpush.bf16.msra.mxu1 %v2521_v50 }
 0x31e   :  { %1318 = vmatpush.bf16.msrb.mxu2 %v2413_v14  ;;  %1331 = vmatpush.bf16.msrb.mxu3 %v2416_v15 }
 0x321   :  { %1293 = vmatpush.bf16.msrb.mxu0 %v2425_v19  ;;  %1306 = vmatpush.bf16.msra.mxu1 %v2560_v4 }
 0x322   :  { %1319 = vmatpush.bf16.msrb.mxu2 %v2443_v25  ;;  %1332 = vmatpush.bf16.msrb.mxu3 %v2445_v26 }
 0x325   :  { %1294 = vmatpush.bf16.msrb.mxu0 %v2454_v29  ;;  %1307 = vmatpush.bf16.msra.mxu1 %v2590_v17 }
 0x326   :  { %1320 = vmatpush.bf16.msrb.mxu2 %v2500_v44  ;;  %1333 = vmatpush.bf16.msrb.mxu3 %v2515_v48 }
 0x329   :  { %1295 = vmatpush.bf16.msrb.mxu0 %v2479_v36  ;;  %1308 = vmatpush.bf16.msra.mxu1 %v2610_v27 }
 0x32a   :  { %1321 = vmatpush.bf16.msrb.mxu2 %v2543_v59  ;;  %1334 = vmatpush.bf16.msrb.mxu3 %v2545_v60 }
 0x32d   :  { %1296 = vmatpush.bf16.msrb.mxu0 %v2534_v56  ;;  %1309 = vmatpush.bf16.msra.mxu1 %v2627_v32 }
 0x32e   :  { %1322 = vmatpush.bf16.msrb.mxu2 %v2566_v6  ;;  %1335 = vmatpush.bf16.msrb.mxu3 %v2575_v9 }
 0x331   :  { %1297 = vmatpush.bf16.msrb.mxu0 %v2569_v7  ;;  %1310 = vmatpush.bf16.msra.mxu1 %v2639_v35 }
 0x332   :  { %1323 = vmatpush.bf16.msrb.mxu2 %v2593_v18  ;;  %1336 = vmatpush.bf16.msrb.mxu3 %v2603_v23 }
 0x390   :  { %v1045_v34 = vpop.f32.mrf.mxu0  ;;  %v1058_v54 = vpop.f32.mrf.mxu1 }
 0x391   :  { %v1088_v58 = vadd.f32 %v1045_v34, %v3084_v12  ;;  %v1089_v41 = vadd.f32 %v1058_v54, %v3085_v46 }
 0x393   :  { %v1908_v63 = vmul.f32 -1.442695, %v1088_v58  ;;  %v1909_v1 = vmul.f32 -1.442695, %v1089_v41 }
 0x395   :  { %2083 = vpow2.f32 %v1908_v63 }
 0x396   :  { %2085 = vpow2.f32 %v1909_v1 }
 0x397   :  { %v1071_v42 = vpop.f32.mrf.mxu2  ;;  %v1084_v43 = vpop.f32.mrf.mxu3 }
 0x398   :  { %v1090_v51 = vadd.f32 %v1071_v42, %v3086_v16  ;;  %v1047_v28 = vpop.f32.mrf.mxu0  ;;  %v1060_v2 = vpop.f32.mrf.mxu1  ;;  %v1091_v21 = vadd.f32 %v1084_v43, %v3087_v38 }
 0x39a   :  { %v1910_v31 = vmul.f32 -1.442695, %v1090_v51 }
 0x39b   :  { %v2084_v47 = vpop.eup %2083 }
 0x39c   :  { %v2086_v62 = vpop.eup %2085  ;;  %v1101_v39 = vadd.f32 1.0, %v2084_v47  ;;  %2087 = vpow2.f32 %v1910_v31 }
 0x39d   :  { %v1102_v24 = vadd.f32 1.0, %v2086_v62 }
 0x39e   :  { %2089 = vrcp.f32 %v1101_v39  ;;  %v1115_v34 = vand.u32 2147483648, %v1101_v39  ;;  %v1113_v58 = vand.u32 2147483647, %v1101_v39  ;;  %vm1109_vm3 = vweird.f32 %v1101_v39 }
 0x39f   :  { %2091 = vrcp.f32 %v1102_v24  ;;  %v1073_v30 = vpop.f32.mrf.mxu2  ;;  %v1086_v20 = vpop.f32.mrf.mxu3  ;;  %v1130_v54 = vand.u32 2147483648, %v1102_v24  ;;  %v1128_v41 = vand.u32 2147483647, %v1102_v24  ;;  %vm1124_vm4 = vweird.f32 %v1102_v24 }
 0x3a0   :  { %v1116_v43 = vor.u32 1.1754944e-38, %v1115_v34  ;;  %vm1114_vm7 = vcmp.eq.f32.partialorder %v1113_v58, 8.507059e+37 }
 0x3a1   :  { %v1131_v51 = vor.u32 1.1754944e-38, %v1130_v54  ;;  %vm1129_vm8 = vcmp.eq.f32.partialorder %v1128_v41, 8.507059e+37 }
 0x3a2   :  { %v2088_v53 = vpop.eup %2087 }
 0x3a3   :  { %v1103_v57 = vadd.f32 1.0, %v2088_v53 }
 0x3a4   :  { %v2090_v13 = vpop.eup %2089 }
 0x3a5   :  { %v2092_v49 = vpop.eup %2091  ;;  %v1105_v8 = vmul.f32 %v2090_v13, %v1101_v39  ;;  %2093 = vrcp.f32 %v1103_v57  ;;  %vm1110_vm1 = vweird.f32 %v2090_v13  ;;  %vm1139_vm10 = vweird.f32 %v1103_v57 }
 0x3a6   :  { %v1120_v37 = vmul.f32 %v2092_v49, %v1102_v24  ;;  %2095 = vtanh.f32 %v1091_v21  ;;  %vm1125_vm2 = vweird.f32 %v2092_v49  ;;  %vm1111_vm5 = vmor %vm1109_vm3, %vm1110_vm1  ;;  %v1145_v21 = vand.u32 2147483648, %v1103_v57 }
 0x3a7   :  { %v1106_v40 = vsub.f32 1.0, %v1105_v8  ;;  %vm1126_vm6 = vmor %vm1124_vm4, %vm1125_vm2 }
 0x3a8   :  { %v1121_v11 = vsub.f32 1.0, %v1120_v37  ;;  %v1146_v37 = vor.u32 1.1754944e-38, %v1145_v21 }
 0x3a9   :  { %v1107_v12 = vmul.f32 %v2090_v13, %v1106_v40 }
 0x3aa   :  { %v1122_v46 = vmul.f32 %v2092_v49, %v1121_v11 }
 0x3ab   :  { %v2094_v63 = vpop.eup %2093  ;;  %v1108_v1 = vadd.f32 %v2090_v13, %v1107_v12 }
 0x3ac   :  { %v1135_v42 = vmul.f32 %v2094_v63, %v1103_v57  ;;  %v1123_v16 = vadd.f32 %v2092_v49, %v1122_v46  ;;  %v2096_v2 = vpop.eup %2095  ;;  %vm1140_vm9 = vweird.f32 %v2094_v63 }
 0x3ad   :  { %v1112_v28 = vsel %vm1111_vm5, %v2090_v13, %v1108_v1  ;;  %v1143_v13 = vand.u32 2147483647, %v1103_v57  ;;  %vm1141_vm11 = vmor %vm1139_vm10, %vm1140_vm9 }
 0x3ae   :  { %v1136_v31 = vsub.f32 1.0, %v1135_v42  ;;  %v1117_v47 = vsel %vm1114_vm7, %v1116_v43, %v1112_v28  ;;  %v1127_v62 = vsel %vm1126_vm6, %v2092_v49, %v1123_v16 }
 0x3af   :  { %v1132_v30 = vsel %vm1129_vm8, %v1131_v51, %v1127_v62  ;;  %v1151_v20 = vmul.f32 %v2096_v2, %v1117_v47  ;;  %vm1144_vm12 = vcmp.eq.f32.partialorder %v1143_v13, 8.507059e+37 }
 0x3b0   :  { %v1150_v53 = vmul.f32 %v1132_v30, %v2925_v5  ;;  %v1137_v38 = vmul.f32 %v2094_v63, %v1136_v31 }
 0x3b2   :  { %v2965_v39 = vadd.f32 %v1151_v20, %v1150_v53  ;;  %v1138_v24 = vadd.f32 %v2094_v63, %v1137_v38 }
 0x3b4   :  { %2097 = vtanh.f32 %v2965_v39  ;;  %v1142_v8 = vsel %vm1141_vm11, %v2094_v63, %v1138_v24 }
 0x3b5   :  { %v1147_v40 = vsel %vm1144_vm12, %v1146_v37, %v1142_v8 }
 0x3ba   :  { %v2098_v49 = vpop.eup %2097 }
 0x3bb   :  { %v1154_v11 = vmul.f32 %v2098_v49, %v1147_v40 }
 0x3bd   :  { %v1162_v34 = vpack.c.bf16 %v1154_v11, %v1154_v11 }
 0x3bf   :  { %1171 = vmatmul.bf16.vlgmr.msra.gmra.mxu0 %v1162_v34  ;;  %1184 = vmatmul.bf16.vlgmr.msrb.gmra.mxu1 %v1162_v34 }
 0x3c0   :  { %1197 = vmatmul.bf16.vlgmr.msra.gmra.mxu2 %v1162_v34  ;;  %1210 = vmatmul.bf16.vlgmr.msra.gmra.mxu3 %v1162_v34 }
 0x3c1   :  { %1417 = vmatpush.bf16.msra.mxu0 %v2314_v45  ;;  %1430 = vmatpush.bf16.msrb.mxu1 %v2433_v22  ;;  %v3090_v22 = vld [vmem:[#allocation17_spill] sm:$0xff] }
 0x3c2   :  { %1443 = vmatpush.bf16.msra.mxu2 %v2334_v52  ;;  %1456 = vmatpush.bf16.msra.mxu3 %v2361_v61 }
 0x3c5   :  { %1418 = vmatpush.bf16.msra.mxu0 %v2340_v55  ;;  %1431 = vmatpush.bf16.msrb.mxu1 %v2468_v33  ;;  %v3088_v55 = vld [vmem:[#allocation16_spill] sm:$0xff] }
 0x3c6   :  { %1444 = vmatpush.bf16.msra.mxu2 %v2374_v0  ;;  %1457 = vmatpush.bf16.msra.mxu3 %v2401_v10  ;;  %v3089_v0 = vld [vmem:[#allocation22_spill] sm:$0xff] }
 0x3c9   :  { %1419 = vmatpush.bf16.msra.mxu0 %v2381_v3  ;;  %1432 = vmatpush.bf16.msrb.mxu1 %v2521_v50 }
 0x3ca   :  { %1445 = vmatpush.bf16.msra.mxu2 %v2413_v14  ;;  %1458 = vmatpush.bf16.msra.mxu3 %v2416_v15 }
 0x3cd   :  { %1420 = vmatpush.bf16.msra.mxu0 %v2425_v19  ;;  %1433 = vmatpush.bf16.msrb.mxu1 %v2560_v4 }
 0x3ce   :  { %1446 = vmatpush.bf16.msra.mxu2 %v2443_v25  ;;  %1459 = vmatpush.bf16.msra.mxu3 %v2445_v26 }
 0x3d1   :  { %1421 = vmatpush.bf16.msra.mxu0 %v2454_v29  ;;  %1434 = vmatpush.bf16.msrb.mxu1 %v2590_v17 }
 0x3d2   :  { %1447 = vmatpush.bf16.msra.mxu2 %v2500_v44  ;;  %1460 = vmatpush.bf16.msra.mxu3 %v2515_v48 }
 0x3d5   :  { %1422 = vmatpush.bf16.msra.mxu0 %v2479_v36  ;;  %1435 = vmatpush.bf16.msrb.mxu1 %v2610_v27 }
 0x3d6   :  { %1448 = vmatpush.bf16.msra.mxu2 %v2543_v59  ;;  %1461 = vmatpush.bf16.msra.mxu3 %v2545_v60 }
 0x3d9   :  { %1423 = vmatpush.bf16.msra.mxu0 %v2534_v56  ;;  %1436 = vmatpush.bf16.msrb.mxu1 %v2627_v32 }
 0x3da   :  { %1449 = vmatpush.bf16.msra.mxu2 %v2566_v6  ;;  %1462 = vmatpush.bf16.msra.mxu3 %v2575_v9 }
 0x3dd   :  { %1424 = vmatpush.bf16.msra.mxu0 %v2569_v7  ;;  %1437 = vmatpush.bf16.msrb.mxu1 %v2639_v35  ;;  %v3091_v7 = vld [vmem:[#allocation18_spill] sm:$0xff] }
 0x3de   :  { %1450 = vmatpush.bf16.msra.mxu2 %v2593_v18  ;;  %1463 = vmatpush.bf16.msra.mxu3 %v2603_v23 }
 0x43c   :  { %v1172_v45 = vpop.f32.mrf.mxu0  ;;  %v1185_v52 = vpop.f32.mrf.mxu1 }
 0x43d   :  { %v1215_v61 = vadd.f32 %v1172_v45, %v3088_v55  ;;  %v1216_v3 = vadd.f32 %v1185_v52, %v3089_v0  ;;  %v3092_v45 = vld [vmem:[#allocation9_spill] sm:$0xff] }
 0x43e   :  { %v3093_v55 = vld [vmem:[#allocation25_spill] sm:$0xff] }
 0x43f   :  { %v1911_v10 = vmul.f32 -1.442695, %v1215_v61  ;;  %v1912_v14 = vmul.f32 -1.442695, %v1216_v3 }
 0x441   :  { %2099 = vpow2.f32 %v1911_v10 }
 0x442   :  { %2101 = vpow2.f32 %v1912_v14 }
 0x443   :  { %v1198_v15 = vpop.f32.mrf.mxu2  ;;  %v1211_v19 = vpop.f32.mrf.mxu3 }
 0x444   :  { %v1217_v25 = vadd.f32 %v1198_v15, %v3090_v22  ;;  %v1174_v26 = vpop.f32.mrf.mxu0  ;;  %v1187_v29 = vpop.f32.mrf.mxu1  ;;  %v1218_v9 = vadd.f32 %v1211_v19, %v3091_v7  ;;  %v3094_v15 = vld [vmem:[#allocation20_spill] sm:$0xff] }
 0x446   :  { %v1913_v33 = vmul.f32 -1.442695, %v1217_v25 }
 0x447   :  { %v2100_v36 = vpop.eup %2099 }
 0x448   :  { %v2102_v44 = vpop.eup %2101  ;;  %v1228_v48 = vadd.f32 1.0, %v2100_v36  ;;  %2103 = vpow2.f32 %v1913_v33 }
 0x449   :  { %v1229_v50 = vadd.f32 1.0, %v2102_v44 }
 0x44a   :  { %2105 = vrcp.f32 %v1228_v48  ;;  %v1242_v35 = vand.u32 2147483648, %v1228_v48  ;;  %v1240_v54 = vand.u32 2147483647, %v1228_v48  ;;  %vm1236_vm15 = vweird.f32 %v1228_v48 }
 0x44b   :  { %2107 = vrcp.f32 %v1229_v50  ;;  %v1200_v56 = vpop.f32.mrf.mxu2  ;;  %v1213_v59 = vpop.f32.mrf.mxu3  ;;  %v1257_v5 = vand.u32 2147483648, %v1229_v50  ;;  %v1255_v58 = vand.u32 2147483647, %v1229_v50  ;;  %vm1251_vm0 = vweird.f32 %v1229_v50 }
 0x44c   :  { %v1243_v1 = vor.u32 1.1754944e-38, %v1242_v35  ;;  %vm1241_vm3 = vcmp.eq.f32.partialorder %v1240_v54, 8.507059e+37 }
 0x44d   :  { %v1258_v43 = vor.u32 1.1754944e-38, %v1257_v5  ;;  %vm1256_vm4 = vcmp.eq.f32.partialorder %v1255_v58, 8.507059e+37 }
 0x44e   :  { %v2104_v60 = vpop.eup %2103 }
 0x44f   :  { %v1230_v4 = vadd.f32 1.0, %v2104_v60 }
 0x450   :  { %v2106_v6 = vpop.eup %2105 }
 0x451   :  { %v2108_v17 = vpop.eup %2107  ;;  %v1232_v18 = vmul.f32 %v2106_v6, %v1228_v48  ;;  %2109 = vrcp.f32 %v1230_v4  ;;  %vm1237_vm13 = vweird.f32 %v2106_v6  ;;  %v1272_v24 = vand.u32 2147483648, %v1230_v4 }
 0x452   :  { %v1247_v23 = vmul.f32 %v2108_v17, %v1229_v50  ;;  %2111 = vtanh.f32 %v1218_v9  ;;  %vm1252_vm14 = vweird.f32 %v2108_v17  ;;  %vm1238_vm1 = vmor %vm1236_vm15, %vm1237_vm13  ;;  %vm1266_vm6 = vweird.f32 %v1230_v4 }
 0x453   :  { %v1233_v27 = vsub.f32 1.0, %v1232_v18  ;;  %vm1253_vm2 = vmor %vm1251_vm0, %vm1252_vm14  ;;  %v1270_v21 = vand.u32 2147483647, %v1230_v4  ;;  %v1273_v8 = vor.u32 1.1754944e-38, %v1272_v24 }
 0x454   :  { %v1248_v32 = vsub.f32 1.0, %v1247_v23 }
 0x455   :  { %v1234_v57 = vmul.f32 %v2106_v6, %v1233_v27  ;;  %vm1271_vm8 = vcmp.eq.f32.partialorder %v1270_v21, 8.507059e+37 }
 0x456   :  { %v1249_v12 = vmul.f32 %v2108_v17, %v1248_v32 }
 0x457   :  { %v2110_v46 = vpop.eup %2109  ;;  %v1235_v41 = vadd.f32 %v2106_v6, %v1234_v57 }
 0x458   :  { %v1262_v63 = vmul.f32 %v2110_v46, %v1230_v4  ;;  %v1250_v42 = vadd.f32 %v2108_v17, %v1249_v12  ;;  %v2112_v51 = vpop.eup %2111  ;;  %vm1267_vm5 = vweird.f32 %v2110_v46  ;;  %v3095_v4 = vld [vmem:[#allocation21_spill] sm:$0xff] }
 0x459   :  { %v1239_v16 = vsel %vm1238_vm1, %v2106_v6, %v1235_v41  ;;  %vm1268_vm7 = vmor %vm1266_vm6, %vm1267_vm5 }
 0x45a   :  { %v1263_v28 = vsub.f32 1.0, %v1262_v63  ;;  %v1244_v2 = vsel %vm1241_vm3, %v1243_v1, %v1239_v16  ;;  %v1254_v31 = vsel %vm1253_vm2, %v2108_v17, %v1250_v42 }
 0x45b   :  { %v1259_v47 = vsel %vm1256_vm4, %v1258_v43, %v1254_v31  ;;  %v1278_v62 = vmul.f32 %v2112_v51, %v1244_v2 }
 0x45c   :  { %v1277_v30 = vmul.f32 %v1259_v47, %v2965_v39  ;;  %v1264_v20 = vmul.f32 %v2110_v46, %v1263_v28 }
 0x45e   :  { %v3005_v53 = vadd.f32 %v1278_v62, %v1277_v30  ;;  %v1265_v38 = vadd.f32 %v2110_v46, %v1264_v20 }
 0x460   :  { %2113 = vtanh.f32 %v3005_v53  ;;  %v1269_v13 = vsel %vm1268_vm7, %v2110_v46, %v1265_v38 }
 0x461   :  { %v1274_v49 = vsel %vm1271_vm8, %v1273_v8, %v1269_v13 }
 0x466   :  { %v2114_v37 = vpop.eup %2113 }
 0x467   :  { %v1281_v40 = vmul.f32 %v2114_v37, %v1274_v49 }
 0x469   :  { %v1289_v11 = vpack.c.bf16 %v1281_v40, %v1281_v40 }
 0x46b   :  { %1298 = vmatmul.bf16.vlgmr.msrb.gmra.mxu0 %v1289_v11  ;;  %1311 = vmatmul.bf16.vlgmr.msra.gmra.mxu1 %v1289_v11 }
 0x46c   :  { %1324 = vmatmul.bf16.vlgmr.msrb.gmra.mxu2 %v1289_v11  ;;  %1337 = vmatmul.bf16.vlgmr.msrb.gmra.mxu3 %v1289_v11  ;;  %v2010_v11 = vld [vmem:[%s3059_s4 + $0x30] sm:$0xff] }
 0x4e8   :  { %v1299_v39 = vpop.f32.mrf.mxu0  ;;  %v1312_v34 = vpop.f32.mrf.mxu1 }
 0x4e9   :  { %v1342_v52 = vadd.f32 %v1299_v39, %v3092_v45  ;;  %v1343_v61 = vadd.f32 %v1312_v34, %v3093_v55  ;;  %v2009_v39 = vld [vmem:[%s3059_s4 + $0x28] sm:$0xff]  ;;  %v2008_v34 = vld [vmem:[%s3059_s4 + $0x20] sm:$0xff]  ;;  %v2007_v45 = vld [vmem:[%s3059_s4 + $0x18] sm:$0xff] }
 0x4ea   :  { %v3097_v55 = vld [vmem:[#allocation10_spill] sm:$0xff] }
 0x4eb   :  { %v1914_v0 = vmul.f32 -1.442695, %v1342_v52  ;;  %v1915_v3 = vmul.f32 -1.442695, %v1343_v61  ;;  %v3096_v52 = vld [vmem:[#allocation8_spill] sm:$0xff] }
 0x4ec   :  { %v205_v61 = vadd.f32 %v3097_v55, %v3096_v52 }
 0x4ed   :  { %2115 = vpow2.f32 %v1914_v0 }
 0x4ee   :  { %2117 = vpow2.f32 %v1915_v3 }
 0x4ef   :  { %v1325_v10 = vpop.f32.mrf.mxu2  ;;  %v1338_v14 = vpop.f32.mrf.mxu3 }
 0x4f0   :  { %v1344_v19 = vadd.f32 %v1325_v10, %v3094_v15  ;;  %v1301_v22 = vpop.f32.mrf.mxu0  ;;  %v1314_v25 = vpop.f32.mrf.mxu1  ;;  %v1345_v6 = vadd.f32 %v1338_v14, %v3095_v4  ;;  %v3098_v14 = vld [vmem:[#allocation26_spill] sm:$0xff] }
 0x4f2   :  { %v1916_v26 = vmul.f32 -1.442695, %v1344_v19  ;;  %v2006_v19 = vld [vmem:[%s3059_s4 + $0x10] sm:$0xff] }
 0x4f3   :  { %v2116_v29 = vpop.eup %2115 }
 0x4f4   :  { %v2118_v33 = vpop.eup %2117  ;;  %v1355_v36 = vadd.f32 1.0, %v2116_v29  ;;  %2119 = vpow2.f32 %v1916_v26  ;;  %v2005_v26 = vld [vmem:[%s3059_s4 + $0x8] sm:$0xff] }
 0x4f5   :  { %v1356_v44 = vadd.f32 1.0, %v2118_v33 }
 0x4f6   :  { %2121 = vrcp.f32 %v1355_v36  ;;  %v1369_v27 = vand.u32 2147483648, %v1355_v36  ;;  %v1367_v5 = vand.u32 2147483647, %v1355_v36  ;;  %vm1363_vm11 = vweird.f32 %v1355_v36 }
 0x4f7   :  { %2123 = vrcp.f32 %v1356_v44  ;;  %v1327_v48 = vpop.f32.mrf.mxu2  ;;  %v1340_v50 = vpop.f32.mrf.mxu3  ;;  %v1384_v32 = vand.u32 2147483648, %v1356_v44  ;;  %v1382_v54 = vand.u32 2147483647, %v1356_v44  ;;  %vm1378_vm12 = vweird.f32 %v1356_v44 }
 0x4f8   :  { %v1370_v41 = vor.u32 1.1754944e-38, %v1369_v27  ;;  %vm1368_vm15 = vcmp.eq.f32.partialorder %v1367_v5, 8.507059e+37 }
 0x4f9   :  { %v1385_v1 = vor.u32 1.1754944e-38, %v1384_v32  ;;  %vm1383_vm0 = vcmp.eq.f32.partialorder %v1382_v54, 8.507059e+37  ;;  %v3100_v32 = vld [vmem:[#allocation24_spill] sm:$0xff] }
 0x4fa   :  { %v2120_v56 = vpop.eup %2119 }
 0x4fb   :  { %v1357_v59 = vadd.f32 1.0, %v2120_v56  ;;  %v2004_v56 = vld [vmem:[%s3059_s4] sm:$0xff] }
 0x4fc   :  { %v2122_v60 = vpop.eup %2121 }
 0x4fd   :  { %v2124_v7 = vpop.eup %2123  ;;  %v1359_v9 = vmul.f32 %v2122_v60, %v1355_v36  ;;  %2125 = vrcp.f32 %v1357_v59  ;;  %vm1364_vm9 = vweird.f32 %v2122_v60  ;;  %v1399_v38 = vand.u32 2147483648, %v1357_v59  ;;  %v3099_v36 = vld [vmem:[#allocation23_spill] sm:$0xff] }
 0x4fe   :  { %v1374_v17 = vmul.f32 %v2124_v7, %v1356_v44  ;;  %2127 = vtanh.f32 %v1345_v6  ;;  %vm1379_vm10 = vweird.f32 %v2124_v7  ;;  %vm1365_vm13 = vmor %vm1363_vm11, %vm1364_vm9  ;;  %vm1393_vm2 = vweird.f32 %v1357_v59 }
 0x4ff   :  { %v1360_v18 = vsub.f32 1.0, %v1359_v9  ;;  %vm1380_vm14 = vmor %vm1378_vm12, %vm1379_vm10  ;;  %v1397_v24 = vand.u32 2147483647, %v1357_v59  ;;  %v1400_v13 = vor.u32 1.1754944e-38, %v1399_v38 }
 0x500   :  { %v1375_v23 = vsub.f32 1.0, %v1374_v17 }
 0x501   :  { %v1361_v35 = vmul.f32 %v2122_v60, %v1360_v18  ;;  %vm1398_vm4 = vcmp.eq.f32.partialorder %v1397_v24, 8.507059e+37 }
 0x502   :  { %v1376_v57 = vmul.f32 %v2124_v7, %v1375_v23 }
 0x503   :  { %v2126_v12 = vpop.eup %2125  ;;  %v1362_v58 = vadd.f32 %v2122_v60, %v1361_v35 }
 0x504   :  { %v1389_v46 = vmul.f32 %v2126_v12, %v1357_v59  ;;  %v1377_v63 = vadd.f32 %v2124_v7, %v1376_v57  ;;  %v2128_v43 = vpop.eup %2127  ;;  %vm1394_vm1 = vweird.f32 %v2126_v12 }
 0x505   :  { %v1366_v42 = vsel %vm1365_vm13, %v2122_v60, %v1362_v58  ;;  %vm1395_vm3 = vmor %vm1393_vm2, %vm1394_vm1  ;;  %vm1623_vm1 = vcmask 39936  }
 0x506   :  { %v1390_v16 = vsub.f32 1.0, %v1389_v46  ;;  %v1371_v51 = vsel %vm1368_vm15, %v1370_v41, %v1366_v42  ;;  %v1381_v28 = vsel %vm1380_vm14, %v2124_v7, %v1377_v63 }
 0x507   :  { %v1386_v2 = vsel %vm1383_vm0, %v1385_v1, %v1381_v28  ;;  %v1405_v31 = vmul.f32 %v2128_v43, %v1371_v51 }
 0x508   :  { %v1404_v47 = vmul.f32 %v1386_v2, %v3005_v53  ;;  %v1391_v62 = vmul.f32 %v2126_v12, %v1390_v16  ;;  %v2011_v53 = vld [vmem:[%s3059_s4 + $0x38] sm:$0xff] }
 0x509   :  { %1610 = vmatpush.bf16.msrb.mxu0 %v2011_v53 }
 0x50a   :  { %v3013_v30 = vadd.f32 %v1405_v31, %v1404_v47  ;;  %v1392_v20 = vadd.f32 %v2126_v12, %v1391_v62 }
 0x50c   :  { %2129 = vtanh.f32 %v3013_v30  ;;  %v1396_v21 = vsel %vm1395_vm3, %v2126_v12, %v1392_v20 }
 0x50d   :  { %v1401_v37 = vsel %vm1398_vm4, %v1400_v13, %v1396_v21  ;;  %1611 = vmatpush.bf16.msrb.mxu0 %v2010_v11 }
 0x511   :  { %1612 = vmatpush.bf16.msrb.mxu0 %v2009_v39 }
 0x512   :  { %v2130_v8 = vpop.eup %2129 }
 0x513   :  { %v1408_v49 = vmul.f32 %v2130_v8, %v1401_v37 }
 0x515   :  { %v1416_v40 = vpack.c.bf16 %v1408_v49, %v1408_v49  ;;  %1613 = vmatpush.bf16.msrb.mxu0 %v2008_v34 }
 0x517   :  { %1425 = vmatmul.bf16.vlgmr.msra.gmra.mxu0 %v1416_v40  ;;  %1438 = vmatmul.bf16.vlgmr.msrb.gmra.mxu1 %v1416_v40 }
 0x518   :  { %1451 = vmatmul.bf16.vlgmr.msra.gmra.mxu2 %v1416_v40  ;;  %1464 = vmatmul.bf16.vlgmr.msra.gmra.mxu3 %v1416_v40 }
 0x519   :  { %1614 = vmatpush.bf16.msrb.mxu0 %v2007_v45 }
 0x51d   :  { %1615 = vmatpush.bf16.msrb.mxu0 %v2006_v19 }
 0x521   :  { %1616 = vmatpush.bf16.msrb.mxu0 %v2005_v26 }
 0x525   :  { %1617 = vmatpush.bf16.msrb.mxu0 %v2004_v56 }
 0x594   :  { %v1426_v0 = vpop.f32.mrf.mxu0  ;;  %v1439_v3 = vpop.f32.mrf.mxu1 }
 0x595   :  { %v1469_v10 = vadd.f32 %v1426_v0, %v205_v61  ;;  %v1470_v15 = vadd.f32 %v1439_v3, %v3098_v14 }
 0x597   :  { %v1917_v22 = vmul.f32 -1.442695, %v1469_v10  ;;  %v1918_v25 = vmul.f32 -1.442695, %v1470_v15 }
 0x599   :  { %2131 = vpow2.f32 %v1917_v22 }
 0x59a   :  { %2133 = vpow2.f32 %v1918_v25 }
 0x59b   :  { %v1452_v29 = vpop.f32.mrf.mxu2  ;;  %v1465_v33 = vpop.f32.mrf.mxu3 }
 0x59c   :  { %v1471_v44 = vadd.f32 %v1452_v29, %v3099_v36  ;;  %v1428_v48 = vpop.f32.mrf.mxu0  ;;  %v1441_v50 = vpop.f32.mrf.mxu1  ;;  %v1472_v35 = vadd.f32 %v1465_v33, %v3100_v32 }
 0x59e   :  { %v1919_v59 = vmul.f32 -1.442695, %v1471_v44 }
 0x59f   :  { %v2132_v60 = vpop.eup %2131 }
 0x5a0   :  { %v2134_v4 = vpop.eup %2133  ;;  %v1482_v6 = vadd.f32 1.0, %v2132_v60  ;;  %2135 = vpow2.f32 %v1919_v59 }
 0x5a1   :  { %v1483_v7 = vadd.f32 1.0, %v2134_v4 }
 0x5a2   :  { %2137 = vrcp.f32 %v1482_v6  ;;  %v1496_v46 = vand.u32 2147483648, %v1482_v6  ;;  %v1494_v1 = vand.u32 2147483647, %v1482_v6  ;;  %vm1490_vm7 = vweird.f32 %v1482_v6 }
 0x5a3   :  { %2139 = vrcp.f32 %v1483_v7  ;;  %v1454_v9 = vpop.f32.mrf.mxu2  ;;  %v1467_v17 = vpop.f32.mrf.mxu3  ;;  %v1511_v41 = vand.u32 2147483648, %v1483_v7  ;;  %v1509_v43 = vand.u32 2147483647, %v1483_v7  ;;  %vm1505_vm8 = vweird.f32 %v1483_v7 }
 0x5a4   :  { %v1497_v2 = vor.u32 1.1754944e-38, %v1496_v46  ;;  %vm1495_vm11 = vcmp.eq.f32.partialorder %v1494_v1, 8.507059e+37 }
 0x5a5   :  { %v1512_v47 = vor.u32 1.1754944e-38, %v1511_v41  ;;  %vm1510_vm12 = vcmp.eq.f32.partialorder %v1509_v43, 8.507059e+37 }
 0x5a6   :  { %v2136_v18 = vpop.eup %2135 }
 0x5a7   :  { %v1484_v23 = vadd.f32 1.0, %v2136_v18 }
 0x5a8   :  { %v2138_v27 = vpop.eup %2137 }
 0x5a9   :  { %v2140_v5 = vpop.eup %2139  ;;  %v1486_v57 = vmul.f32 %v2138_v27, %v1482_v6  ;;  %2141 = vrcp.f32 %v1484_v23  ;;  %vm1491_vm5 = vweird.f32 %v2138_v27  ;;  %v1526_v11 = vand.u32 2147483648, %v1484_v23 }
 0x5aa   :  { %v1501_v54 = vmul.f32 %v2140_v5, %v1483_v7  ;;  %2143 = vtanh.f32 %v1472_v35  ;;  %vm1506_vm6 = vweird.f32 %v2140_v5  ;;  %vm1492_vm9 = vmor %vm1490_vm7, %vm1491_vm5  ;;  %vm1520_vm14 = vweird.f32 %v1484_v23 }
 0x5ab   :  { %v1487_v12 = vsub.f32 1.0, %v1486_v57  ;;  %vm1507_vm10 = vmor %vm1505_vm8, %vm1506_vm6  ;;  %v1524_v39 = vand.u32 2147483647, %v1484_v23  ;;  %v1527_v45 = vor.u32 1.1754944e-38, %v1526_v11 }
 0x5ac   :  { %v1502_v58 = vsub.f32 1.0, %v1501_v54 }
 0x5ad   :  { %v1488_v63 = vmul.f32 %v2138_v27, %v1487_v12  ;;  %vm1525_vm0 = vcmp.eq.f32.partialorder %v1524_v39, 8.507059e+37 }
 0x5ae   :  { %v1503_v42 = vmul.f32 %v2140_v5, %v1502_v58 }
 0x5af   :  { %v2142_v16 = vpop.eup %2141  ;;  %v1489_v51 = vadd.f32 %v2138_v27, %v1488_v63 }
 0x5b0   :  { %v1516_v28 = vmul.f32 %v2142_v16, %v1484_v23  ;;  %v1504_v31 = vadd.f32 %v2140_v5, %v1503_v42  ;;  %v2144_v20 = vpop.eup %2143  ;;  %vm1521_vm13 = vweird.f32 %v2142_v16 }
 0x5b1   :  { %v1493_v62 = vsel %vm1492_vm9, %v2138_v27, %v1489_v51  ;;  %vm1522_vm15 = vmor %vm1520_vm14, %vm1521_vm13 }
 0x5b2   :  { %v1517_v38 = vsub.f32 1.0, %v1516_v28  ;;  %v1498_v24 = vsel %vm1495_vm11, %v1497_v2, %v1493_v62  ;;  %v1508_v21 = vsel %vm1507_vm10, %v2140_v5, %v1504_v31 }
 0x5b3   :  { %v1513_v13 = vsel %vm1510_vm12, %v1512_v47, %v1508_v21  ;;  %v1532_v8 = vmul.f32 %v2144_v20, %v1498_v24 }
 0x5b4   :  { %v1531_v37 = vmul.f32 %v1513_v13, %v3013_v30  ;;  %v1518_v49 = vmul.f32 %v2142_v16, %v1517_v38  ;;  %v2018_v30 = vld [vmem:[%s3060_s5] ss:$0 sm:$0xff]  ;;  %s2178_s5 = smov [#allocation5]  }
 0x5b5   :  { %s1654_s16 = sshll.u32 %s2178_s5, 4  ;;  %s1655_s16 = int_to_ptr.vmem [resolvable:$true] %s1654_s16 }
 0x5b6   :  { %v1533_v40 = vadd.f32 %v1532_v8, %v1531_v37  ;;  %v1519_v53 = vadd.f32 %v2142_v16, %v1518_v49 }
 0x5b8   :  { %2145 = vtanh.f32 %v1533_v40  ;;  %v1523_v34 = vsel %vm1522_vm15, %v2142_v16, %v1519_v53 }
 0x5b9   :  { %v1528_v55 = vsel %vm1525_vm0, %v1527_v45, %v1523_v34 }
 0x5be   :  { %v2146_v52 = vpop.eup %2145 }
 0x5bf   :  { %v1535_v61 = vmul.f32 %v2146_v52, %v1528_v55 }
 0x5c1   :  { %v1541_v0 = vpack.c.bf16 %v1535_v61, %v1535_v61 }
 0x5c3   :  { %1618 = vmatmul.bf16.vlgmr.msrb.gmra.mxu0 %v1541_v0 }
 0x640   :  { %v1619_v3 = vpop.f32.mrf.mxu0 }
 0x641   :  { %v1620_v10 = vadd.f32 %v2018_v30, %v1619_v3 }
 0x643   :  { %v1624_v14 = vsel %vm1623_vm1, %v1620_v10, -inf }
 0x644   :  { %1625 = vmax.xlane.f32.xlu0 %v1624_v14 }
 0x648   :  { %v1621_v15 = vpop.f32.mrf.mxu0 }
 0x6b7   :  { %v1626_v19 = vpop.xlane.xlu0 %1625 }
 0x6b8   :  { %v1627_v22 = vsub.f32 %v1620_v10, %v1626_v19 }
 0x6ba   :  { %v1628_v25 = vmul.f32 1.442695, %v1627_v22 }
 0x6bc   :  { %2147 = vpow2.f32 %v1628_v25 }
 0x6c2   :  { %v2148_v26 = vpop.eup %2147 }
 0x6c3   :  { %v1630_v29 = vsel %vm1623_vm1, %v2148_v26, 0.0 }
 0x6c4   :  { %1631 = vadd.xlane.f32.xlu0 %v1630_v29 }
 0x737   :  { %v1632_v33 = vpop.xlane.xlu0 %1631 }
 0x738   :  { %2149 = vrcp.f32 %v1632_v33  ;;  %v1644_v50 = vand.u32 2147483648, %v1632_v33  ;;  %v1642_v59 = vand.u32 2147483647, %v1632_v33  ;;  %vm1638_vm3 = vweird.f32 %v1632_v33 }
 0x73a   :  { %v1645_v4 = vor.u32 1.1754944e-38, %v1644_v50  ;;  %vm1643_vm5 = vcmp.eq.f32.partialorder %v1642_v59, 8.507059e+37 }
 0x73e   :  { %v2150_v36 = vpop.eup %2149 }
 0x73f   :  { %v1634_v44 = vmul.f32 %v2150_v36, %v1632_v33  ;;  %vm1639_vm2 = vweird.f32 %v2150_v36 }
 0x740   :  { %vm1640_vm4 = vmor %vm1638_vm3, %vm1639_vm2 }
 0x741   :  { %v1635_v48 = vsub.f32 1.0, %v1634_v44 }
 0x743   :  { %v1636_v56 = vmul.f32 %v2150_v36, %v1635_v48 }
 0x745   :  { %v1637_v60 = vadd.f32 %v2150_v36, %v1636_v56 }
 0x747   :  { %v1641_v6 = vsel %vm1640_vm4, %v2150_v36, %v1637_v60 }
 0x748   :  { %v1646_v7 = vsel %vm1643_vm5, %v1645_v4, %v1641_v6 }
 0x749   :  { %v1647_v9 = vmul.f32 %v2148_v26, %v1646_v7 }
 0x74b   :  { %1648 = vst.msk [vmem:[#allocation5] sm:$0xff] %vm1623_vm1, %v1647_v9 }
 0x74c   :  { %1659 = dma.vmem_to_hbm [thread:$0]  %s1655_s16, 128, %s1657_s0, [#allocation6]  }
 0x74d   :  { %2175 = dma.done.wait [#allocation6], 128  }
 0x74e   :  { %2176 = vsyncadd [#allocation6], 4294967168 }
 0x74f   :  { %1664 = vsyncpa [#allocation6], 1 }

</bundles_post_ra>
